<compile_context>
chip_gen: v7x
topology: tpu7x:2x2x1
jax: 0.10.0
libtpu: 0.0.40
codegen_flags: <defaults>
</compile_context>

<pallas_src>
import functools

import jax
import jax.numpy as jnp
from jax.experimental import pallas as pl
from jax.experimental.pallas import tpu as pltpu


def _round_up(x: int, m: int) -> int:
    return ((x + m - 1) // m) * m


# ---------------------------------------------------------------------------
# Kernel 1: time-chunked tanh-RNN recurrence (embedding gather fused in).
#   grid = (batch_blocks [parallel], time_chunks [arbitrary/sequential])
# ---------------------------------------------------------------------------
def rnn_recurrence_kernel(ids_ref, h0_ref, wih_ref, whh_ref, b_ref,
                          y_ref, state_ref, h_scratch,
                          *, seq_len, t_pad, tc, b_pad, bb):
    bi = pl.program_id(0)   # batch block (parallel across cores)
    ci = pl.program_id(1)   # time chunk  (sequential; recurrence carried in scratch)

    @pl.when(ci == 0)
    def _():
        h_scratch[...] = h0_ref[...]

    # Loop-invariant operands, hoisted out of the unrolled time loop.
    whh = whh_ref[...]                                          # (H_pad, H_pad)
    bias = jnp.broadcast_to(b_ref[...], (bb, b_ref.shape[1]))   # (Bb, H_pad)
    chunk_base = ci * tc

    def step(s, h):
        t = chunk_base + s
        # x is one-hot, so x @ W_ih^T is just a row gather of W_ih^T:
        # no (T,B,V) one-hot HBM traffic and no (B,V)x(V,H) MXU pass.
        rows = [wih_ref[pl.ds(ids_ref[t * b_pad + bi * bb + b], 1), :]
                for b in range(bb)]
        emb = jnp.concatenate(rows, axis=0)                     # (Bb, H_pad)
        h_new = jnp.tanh(
            emb + jnp.dot(h, whh, preferred_element_type=jnp.float32) + bias)
        if t_pad != seq_len:    # static check; freeze h on padded trailing steps
            h_new = jnp.where(t < seq_len, h_new, h)
        y_ref[s] = h_new
        return h_new

    h_last = jax.lax.fori_loop(0, tc, step, h_scratch[...], unroll=True)
    h_scratch[...] = h_last

    # Final hidden state: written only once, on the last time chunk.
    @pl.when(ci == pl.num_programs(1) - 1)
    def _():
        state_ref[...] = h_last


# ---------------------------------------------------------------------------
# Kernel 2: decoupled, fully parallel output projection  logits = H @ W_out^T + b.
# ---------------------------------------------------------------------------
def projection_kernel(h_ref, w_ref, b_ref, out_ref):
    out_ref[...] = (
        jnp.dot(h_ref[...], w_ref[...], preferred_element_type=jnp.float32)
        + b_ref[...])


# ---------------------------------------------------------------------------
# Wrapper matching the PyTorch module's forward().
# ---------------------------------------------------------------------------
def rnn_model_forward(inputs, state, params, vocab_size, *, time_chunk=8):
    """
    inputs : (B, T) int32 token ids
    state  : (1, B, H) float32 initial hidden state (num_directions*num_layers = 1)
    returns (output, new_state) matching the PyTorch module:
      output : (T*B, vocab_size) float32
      state  : (1, B, H) float32
    """
    B, T = inputs.shape
    H = params["W_hh"].shape[0]
    V = vocab_size

    Bb = 8                      # batch rows per grid block (sublane unit)
    Tc = time_chunk             # recurrence steps per grid step
    B_pad = _round_up(B, Bb)
    T_pad = _round_up(T, Tc)
    H_pad = _round_up(H, 128)
    V_pad = _round_up(V, 128)

    # ---- glue: pad everything to lane/sublane-dense shapes (zero pad is exact) ----
    ids = jnp.pad(inputs.T.astype(jnp.int32), ((0, T_pad - T), (0, B_pad - B)))
    ids_flat = ids.reshape(-1)                                   # (T_pad * B_pad,)

    def pad2(x, r, c):
        return jnp.pad(x.astype(jnp.float32),
                       ((0, r - x.shape[0]), (0, c - x.shape[1])))

    wih_t = pad2(params["W_ih"].T, V_pad, H_pad)                 # (V_pad, H_pad)
    whh_t = pad2(params["W_hh"].T, H_pad, H_pad)                 # (H_pad, H_pad)
    b_sum = pad2((params["b_ih"] + params["b_hh"]).reshape(1, H), 1, H_pad)
    wout_t = pad2(params["W_out"].T, H_pad, V_pad)               # (H_pad, V_pad)
    bout = pad2(params["b_out"].reshape(1, V), 1, V_pad)         # (1, V_pad)
    h0 = pad2(state[0], B_pad, H_pad)                            # (B_pad, H_pad)

    n_bblocks = B_pad // Bb
    n_chunks = T_pad // Tc

    rec_kernel = functools.partial(
        rnn_recurrence_kernel,
        seq_len=T, t_pad=T_pad, tc=Tc, b_pad=B_pad, bb=Bb)

    # ---- recurrent kernel: emits all hidden states + final state ----
    y_hidden, final_h = pl.pallas_call(
        rec_kernel,
        out_shape=(jax.ShapeDtypeStruct((T_pad, B_pad, H_pad), jnp.float32),
                   jax.ShapeDtypeStruct((B_pad, H_pad), jnp.float32)),
        grid_spec=pltpu.PrefetchScalarGridSpec(
            num_scalar_prefetch=1,                    # token ids -> SMEM
            grid=(n_bblocks, n_chunks),
            in_specs=[
                pl.BlockSpec((Bb, H_pad), lambda bi, ci, ids: (bi, 0)),    # h0
                pl.BlockSpec((V_pad, H_pad), lambda bi, ci, ids: (0, 0)),  # W_ih^T
                pl.BlockSpec((H_pad, H_pad), lambda bi, ci, ids: (0, 0)),  # W_hh^T
                pl.BlockSpec((1, H_pad), lambda bi, ci, ids: (0, 0)),      # b_ih + b_hh
            ],
            out_specs=(
                pl.BlockSpec((Tc, Bb, H_pad), lambda bi, ci, ids: (ci, bi, 0)),
                pl.BlockSpec((Bb, H_pad), lambda bi, ci, ids: (bi, 0)),
            ),
            scratch_shapes=[pltpu.VMEM((Bb, H_pad), jnp.float32)],  # recurrent carry
        ),
        compiler_params=pltpu.CompilerParams(
            dimension_semantics=("parallel", "arbitrary")),
    )(ids_flat, h0, wih_t, whh_t, b_sum)

    # ---- decoupled blocked output projection (megacore-shardable) ----
    M = T_pad * B_pad
    tm = Tc * B_pad                               # rows per tile; divides M exactly
    y2d = y_hidden.reshape(M, H_pad)

    logits = pl.pallas_call(
        projection_kernel,
        out_shape=jax.ShapeDtypeStruct((M, V_pad), jnp.float32),
        grid_spec=pltpu.PrefetchScalarGridSpec(
            num_scalar_prefetch=0,
            grid=(M // tm,),
            in_specs=[
                pl.BlockSpec((tm, H_pad), lambda i: (i, 0)),
                pl.BlockSpec((H_pad, V_pad), lambda i: (0, 0)),
                pl.BlockSpec((1, V_pad), lambda i: (0, 0)),
            ],
            out_specs=pl.BlockSpec((tm, V_pad), lambda i: (i, 0)),
        ),
        compiler_params=pltpu.CompilerParams(
            dimension_semantics=("parallel",)),
    )(y2d, wout_t, bout)

    # ---- un-pad back to the module's output layout ----
    output = logits.reshape(T_pad, B_pad, V_pad)[:T, :B, :V].reshape(T * B, V)
    new_state = final_h[:B, :H][None]             # (1, B, H)
    return output, new_state


def _reference_forward(inputs, state, params, vocab_size):
    """Pure-JAX reference (mirrors PyTorch nn.RNN(tanh) + Linear)."""
    X = jax.nn.one_hot(inputs.T, vocab_size, dtype=jnp.float32)   # (T, B, V)
    h0 = state[0]

    def step(h, x_t):
        h_new = jnp.tanh(x_t @ params["W_ih"].T + params["b_ih"]
                         + h @ params["W_hh"].T + params["b_hh"])
        return h_new, h_new

    h_final, Y = jax.lax.scan(step, h0, X)                        # Y: (T, B, H)
    out = Y.reshape(-1, Y.shape[-1]) @ params["W_out"].T + params["b_out"]
    return out, h_final[None]


if __name__ == "__main__":
    # Small shapes consistent with the module's forward.
    B, T = 2, 8          # (batch, time steps)
    H = 32               # rnn hidden size
    V = 32               # vocab size

    key = jax.random.PRNGKey(0)
    k_in, k_wih, k_whh, k_bih, k_bhh, k_wo, k_bo = jax.random.split(key, 7)

    # Deterministic parameter init (PyTorch-style uniform(-1/sqrt(H), 1/sqrt(H))).
    s = 1.0 / jnp.sqrt(H).astype(jnp.float32)
    params = {
        "W_ih": jax.random.uniform(k_wih, (H, V), jnp.float32, -s, s),
        "W_hh": jax.random.uniform(k_whh, (H, H), jnp.float32, -s, s),
        "b_ih": jax.random.uniform(k_bih, (H,), jnp.float32, -s, s),
        "b_hh": jax.random.uniform(k_bhh, (H,), jnp.float32, -s, s),
        "W_out": jax.random.uniform(k_wo, (V, H), jnp.float32, -s, s),
        "b_out": jax.random.uniform(k_bo, (V,), jnp.float32, -s, s),
    }

    inputs = jax.random.randint(k_in, (B, T), 0, V, dtype=jnp.int32)
    state = jnp.zeros((1, B, H), jnp.float32)   # begin_state()

    out, new_state = rnn_model_forward(inputs, state, params, V)
    out = jax.block_until_ready(out)
    new_state = jax.block_until_ready(new_state)

    assert out.shape == (T * B, V), out.shape
    assert new_state.shape == (1, B, H), new_state.shape

    ref_out, ref_state = _reference_forward(inputs, state, params, V)
    assert jnp.allclose(out, ref_out, atol=1e-4), "output mismatch vs reference"
    assert jnp.allclose(new_state, ref_state, atol=1e-4), "state mismatch vs reference"

    print("KERNEL_OK")
</pallas_src>

<mosaic_0001>
module attributes {stable_mosaic.version = 11 : i64} {
  func.func @rnn_recurrence_kernel(%arg0: i32, %arg1: i32, %arg2: memref<64xi32, #tpu.memory_space<smem>>, %arg3: memref<8x128xf32, #tpu.memory_space<vmem>>, %arg4: memref<128x128xf32, #tpu.memory_space<vmem>>, %arg5: memref<128x128xf32, #tpu.memory_space<vmem>>, %arg6: memref<1x128xf32, #tpu.memory_space<vmem>>, %arg7: memref<8x8x128xf32, #tpu.memory_space<vmem>>, %arg8: memref<8x128xf32, #tpu.memory_space<vmem>>, %arg9: memref<8x128xf32, #tpu.memory_space<vmem>>) attributes {dimension_semantics = [#tpu.dimension_semantics<parallel>, #tpu.dimension_semantics<arbitrary>], iteration_bounds = array<i64: 1, 1>, scalar_prefetch = 1 : i64, scratch_operands = 1 : i64, tpu.core_type = #tpu.core_type<tc>, window_params = [{transform_indices = @transform_0, window_bounds = array<i64: 8, 128>}, {pipeline_mode = #tpu.pipeline_mode<synchronous>, transform_indices = @transform_1, window_bounds = array<i64: 128, 128>}, {pipeline_mode = #tpu.pipeline_mode<synchronous>, transform_indices = @transform_2, window_bounds = array<i64: 128, 128>}, {pipeline_mode = #tpu.pipeline_mode<synchronous>, transform_indices = @transform_3, window_bounds = array<i64: 1, 128>}, {transform_indices = @transform_4, window_bounds = array<i64: 8, 8, 128>}, {transform_indices = @transform_5, window_bounds = array<i64: 8, 128>}]} {
    %c0_i32 = arith.constant 0 : i32
    %0 = arith.cmpi eq, %arg1, %c0_i32 : i32
    %1 = arith.extui %0 : i1 to i32
    %c0_i32_0 = arith.constant 0 : i32
    %2 = arith.cmpi ne, %1, %c0_i32_0 : i32
    scf.if %2 {
      %c0_291 = arith.constant 0 : index
      %c0_292 = arith.constant 0 : index
      %605 = vector.load %arg3[%c0_291, %c0_292] : memref<8x128xf32, #tpu.memory_space<vmem>>, vector<8x128xf32>
      %c0_293 = arith.constant 0 : index
      %c0_294 = arith.constant 0 : index
      %606 = vector.load %arg9[%c0_293, %c0_294] : memref<8x128xf32, #tpu.memory_space<vmem>>, vector<8x128xf32>
      tpu.vector_store %arg9[%c0_293, %c0_294], %605 {strides = array<i32>} : memref<8x128xf32, #tpu.memory_space<vmem>>, vector<8x128xf32>,
    } else {
    }
    %c0 = arith.constant 0 : index
    %c0_1 = arith.constant 0 : index
    %3 = vector.load %arg5[%c0, %c0_1] : memref<128x128xf32, #tpu.memory_space<vmem>>, vector<128x128xf32>
    %c0_2 = arith.constant 0 : index
    %c0_3 = arith.constant 0 : index
    %4 = vector.load %arg6[%c0_2, %c0_3] : memref<1x128xf32, #tpu.memory_space<vmem>>, vector<1x128xf32>
    %5 = vector.shape_cast %4 : vector<1x128xf32> to vector<1x128xf32>
    %6 = vector.broadcast %5 : vector<1x128xf32> to vector<8x128xf32>
    %c8_i32 = arith.constant 8 : i32
    %7 = arith.muli %arg1, %c8_i32 : i32
    %c0_4 = arith.constant 0 : index
    %c0_5 = arith.constant 0 : index
    %8 = vector.load %arg9[%c0_4, %c0_5] : memref<8x128xf32, #tpu.memory_space<vmem>>, vector<8x128xf32>
    %c0_i32_6 = arith.constant 0 : i32
    %9 = arith.addi %7, %c0_i32_6 : i32
    %c8_i32_7 = arith.constant 8 : i32
    %10 = arith.muli %9, %c8_i32_7 : i32
    %c8_i32_8 = arith.constant 8 : i32
    %11 = arith.muli %arg0, %c8_i32_8 : i32
    %12 = arith.addi %10, %11 : i32
    %c0_i32_9 = arith.constant 0 : i32
    %13 = arith.addi %12, %c0_i32_9 : i32
    %14 = arith.index_cast %13 : i32 to index
    %15 = memref.load %arg2[%14] : memref<64xi32, #tpu.memory_space<smem>>
    %16 = arith.index_cast %15 : i32 to index
    %c0_10 = arith.constant 0 : index
    %17 = vector.load %arg4[%16, %c0_10] : memref<128x128xf32, #tpu.memory_space<vmem>>, vector<1x128xf32>
    %c8_i32_11 = arith.constant 8 : i32
    %18 = arith.muli %9, %c8_i32_11 : i32
    %c8_i32_12 = arith.constant 8 : i32
    %19 = arith.muli %arg0, %c8_i32_12 : i32
    %20 = arith.addi %18, %19 : i32
    %c1_i32 = arith.constant 1 : i32
    %21 = arith.addi %20, %c1_i32 : i32
    %22 = arith.index_cast %21 : i32 to index
    %23 = memref.load %arg2[%22] : memref<64xi32, #tpu.memory_space<smem>>
    %24 = arith.index_cast %23 : i32 to index
    %c0_13 = arith.constant 0 : index
    %25 = vector.load %arg4[%24, %c0_13] : memref<128x128xf32, #tpu.memory_space<vmem>>, vector<1x128xf32>
    %c8_i32_14 = arith.constant 8 : i32
    %26 = arith.muli %9, %c8_i32_14 : i32
    %c8_i32_15 = arith.constant 8 : i32
    %27 = arith.muli %arg0, %c8_i32_15 : i32
    %28 = arith.addi %26, %27 : i32
    %c2_i32 = arith.constant 2 : i32
    %29 = arith.addi %28, %c2_i32 : i32
    %30 = arith.index_cast %29 : i32 to index
    %31 = memref.load %arg2[%30] : memref<64xi32, #tpu.memory_space<smem>>
    %32 = arith.index_cast %31 : i32 to index
    %c0_16 = arith.constant 0 : index
    %33 = vector.load %arg4[%32, %c0_16] : memref<128x128xf32, #tpu.memory_space<vmem>>, vector<1x128xf32>
    %c8_i32_17 = arith.constant 8 : i32
    %34 = arith.muli %9, %c8_i32_17 : i32
    %c8_i32_18 = arith.constant 8 : i32
    %35 = arith.muli %arg0, %c8_i32_18 : i32
    %36 = arith.addi %34, %35 : i32
    %c3_i32 = arith.constant 3 : i32
    %37 = arith.addi %36, %c3_i32 : i32
    %38 = arith.index_cast %37 : i32 to index
    %39 = memref.load %arg2[%38] : memref<64xi32, #tpu.memory_space<smem>>
    %40 = arith.index_cast %39 : i32 to index
    %c0_19 = arith.constant 0 : index
    %41 = vector.load %arg4[%40, %c0_19] : memref<128x128xf32, #tpu.memory_space<vmem>>, vector<1x128xf32>
    %c8_i32_20 = arith.constant 8 : i32
    %42 = arith.muli %9, %c8_i32_20 : i32
    %c8_i32_21 = arith.constant 8 : i32
    %43 = arith.muli %arg0, %c8_i32_21 : i32
    %44 = arith.addi %42, %43 : i32
    %c4_i32 = arith.constant 4 : i32
    %45 = arith.addi %44, %c4_i32 : i32
    %46 = arith.index_cast %45 : i32 to index
    %47 = memref.load %arg2[%46] : memref<64xi32, #tpu.memory_space<smem>>
    %48 = arith.index_cast %47 : i32 to index
    %c0_22 = arith.constant 0 : index
    %49 = vector.load %arg4[%48, %c0_22] : memref<128x128xf32, #tpu.memory_space<vmem>>, vector<1x128xf32>
    %c8_i32_23 = arith.constant 8 : i32
    %50 = arith.muli %9, %c8_i32_23 : i32
    %c8_i32_24 = arith.constant 8 : i32
    %51 = arith.muli %arg0, %c8_i32_24 : i32
    %52 = arith.addi %50, %51 : i32
    %c5_i32 = arith.constant 5 : i32
    %53 = arith.addi %52, %c5_i32 : i32
    %54 = arith.index_cast %53 : i32 to index
    %55 = memref.load %arg2[%54] : memref<64xi32, #tpu.memory_space<smem>>
    %56 = arith.index_cast %55 : i32 to index
    %c0_25 = arith.constant 0 : index
    %57 = vector.load %arg4[%56, %c0_25] : memref<128x128xf32, #tpu.memory_space<vmem>>, vector<1x128xf32>
    %c8_i32_26 = arith.constant 8 : i32
    %58 = arith.muli %9, %c8_i32_26 : i32
    %c8_i32_27 = arith.constant 8 : i32
    %59 = arith.muli %arg0, %c8_i32_27 : i32
    %60 = arith.addi %58, %59 : i32
    %c6_i32 = arith.constant 6 : i32
    %61 = arith.addi %60, %c6_i32 : i32
    %62 = arith.index_cast %61 : i32 to index
    %63 = memref.load %arg2[%62] : memref<64xi32, #tpu.memory_space<smem>>
    %64 = arith.index_cast %63 : i32 to index
    %c0_28 = arith.constant 0 : index
    %65 = vector.load %arg4[%64, %c0_28] : memref<128x128xf32, #tpu.memory_space<vmem>>, vector<1x128xf32>
    %c8_i32_29 = arith.constant 8 : i32
    %66 = arith.muli %9, %c8_i32_29 : i32
    %c8_i32_30 = arith.constant 8 : i32
    %67 = arith.muli %arg0, %c8_i32_30 : i32
    %68 = arith.addi %66, %67 : i32
    %c7_i32 = arith.constant 7 : i32
    %69 = arith.addi %68, %c7_i32 : i32
    %70 = arith.index_cast %69 : i32 to index
    %71 = memref.load %arg2[%70] : memref<64xi32, #tpu.memory_space<smem>>
    %72 = arith.index_cast %71 : i32 to index
    %c0_31 = arith.constant 0 : index
    %73 = vector.load %arg4[%72, %c0_31] : memref<128x128xf32, #tpu.memory_space<vmem>>, vector<1x128xf32>
    %74 = tpu.concatenate %17, %25, %33, %41, %49, %57, %65, %73 in 0 : vector<1x128xf32>, vector<1x128xf32>, vector<1x128xf32>, vector<1x128xf32>, vector<1x128xf32>, vector<1x128xf32>, vector<1x128xf32>, vector<1x128xf32> -> vector<8x128xf32>
    %cst = arith.constant dense<0.000000e+00> : vector<8x128xf32>
    %75 = tpu.matmul %8, %3, %cst {dimension_numbers = #tpu.dot_dimension_numbers<[1], [0], [0], [1], [0, 0, 1, 1], [], []>} : vector<8x128xf32>, vector<128x128xf32>, vector<8x128xf32> -> vector<8x128xf32>
    %76 = arith.addf %74, %75 : vector<8x128xf32>
    %77 = arith.addf %76, %6 : vector<8x128xf32>
    %78 = math.tanh %77 : vector<8x128xf32>
    %79 = arith.index_cast %c0_i32_6 : i32 to index
    %c0_32 = arith.constant 0 : index
    %c0_33 = arith.constant 0 : index
    %80 = vector.load %arg7[%79, %c0_32, %c0_33] : memref<8x8x128xf32, #tpu.memory_space<vmem>>, vector<1x8x128xf32>
    %81 = vector.shape_cast %80 : vector<1x8x128xf32> to vector<8x128xf32>
    %82 = vector.shape_cast %78 : vector<8x128xf32> to vector<1x8x128xf32>
    tpu.vector_store %arg7[%79, %c0_32, %c0_33], %82 {strides = array<i32>} : memref<8x8x128xf32, #tpu.memory_space<vmem>>, vector<1x8x128xf32>,
    %c1_i32_34 = arith.constant 1 : i32
    %83 = arith.addi %7, %c1_i32_34 : i32
    %c8_i32_35 = arith.constant 8 : i32
    %84 = arith.muli %83, %c8_i32_35 : i32
    %c8_i32_36 = arith.constant 8 : i32
    %85 = arith.muli %arg0, %c8_i32_36 : i32
    %86 = arith.addi %84, %85 : i32
    %c0_i32_37 = arith.constant 0 : i32
    %87 = arith.addi %86, %c0_i32_37 : i32
    %88 = arith.index_cast %87 : i32 to index
    %89 = memref.load %arg2[%88] : memref<64xi32, #tpu.memory_space<smem>>
    %90 = arith.index_cast %89 : i32 to index
    %c0_38 = arith.constant 0 : index
    %91 = vector.load %arg4[%90, %c0_38] : memref<128x128xf32, #tpu.memory_space<vmem>>, vector<1x128xf32>
    %c8_i32_39 = arith.constant 8 : i32
    %92 = arith.muli %83, %c8_i32_39 : i32
    %c8_i32_40 = arith.constant 8 : i32
    %93 = arith.muli %arg0, %c8_i32_40 : i32
    %94 = arith.addi %92, %93 : i32
    %c1_i32_41 = arith.constant 1 : i32
    %95 = arith.addi %94, %c1_i32_41 : i32
    %96 = arith.index_cast %95 : i32 to index
    %97 = memref.load %arg2[%96] : memref<64xi32, #tpu.memory_space<smem>>
    %98 = arith.index_cast %97 : i32 to index
    %c0_42 = arith.constant 0 : index
    %99 = vector.load %arg4[%98, %c0_42] : memref<128x128xf32, #tpu.memory_space<vmem>>, vector<1x128xf32>
    %c8_i32_43 = arith.constant 8 : i32
    %100 = arith.muli %83, %c8_i32_43 : i32
    %c8_i32_44 = arith.constant 8 : i32
    %101 = arith.muli %arg0, %c8_i32_44 : i32
    %102 = arith.addi %100, %101 : i32
    %c2_i32_45 = arith.constant 2 : i32
    %103 = arith.addi %102, %c2_i32_45 : i32
    %104 = arith.index_cast %103 : i32 to index
    %105 = memref.load %arg2[%104] : memref<64xi32, #tpu.memory_space<smem>>
    %106 = arith.index_cast %105 : i32 to index
    %c0_46 = arith.constant 0 : index
    %107 = vector.load %arg4[%106, %c0_46] : memref<128x128xf32, #tpu.memory_space<vmem>>, vector<1x128xf32>
    %c8_i32_47 = arith.constant 8 : i32
    %108 = arith.muli %83, %c8_i32_47 : i32
    %c8_i32_48 = arith.constant 8 : i32
    %109 = arith.muli %arg0, %c8_i32_48 : i32
    %110 = arith.addi %108, %109 : i32
    %c3_i32_49 = arith.constant 3 : i32
    %111 = arith.addi %110, %c3_i32_49 : i32
    %112 = arith.index_cast %111 : i32 to index
    %113 = memref.load %arg2[%112] : memref<64xi32, #tpu.memory_space<smem>>
    %114 = arith.index_cast %113 : i32 to index
    %c0_50 = arith.constant 0 : index
    %115 = vector.load %arg4[%114, %c0_50] : memref<128x128xf32, #tpu.memory_space<vmem>>, vector<1x128xf32>
    %c8_i32_51 = arith.constant 8 : i32
    %116 = arith.muli %83, %c8_i32_51 : i32
    %c8_i32_52 = arith.constant 8 : i32
    %117 = arith.muli %arg0, %c8_i32_52 : i32
    %118 = arith.addi %116, %117 : i32
    %c4_i32_53 = arith.constant 4 : i32
    %119 = arith.addi %118, %c4_i32_53 : i32
    %120 = arith.index_cast %119 : i32 to index
    %121 = memref.load %arg2[%120] : memref<64xi32, #tpu.memory_space<smem>>
    %122 = arith.index_cast %121 : i32 to index
    %c0_54 = arith.constant 0 : index
    %123 = vector.load %arg4[%122, %c0_54] : memref<128x128xf32, #tpu.memory_space<vmem>>, vector<1x128xf32>
    %c8_i32_55 = arith.constant 8 : i32
    %124 = arith.muli %83, %c8_i32_55 : i32
    %c8_i32_56 = arith.constant 8 : i32
    %125 = arith.muli %arg0, %c8_i32_56 : i32
    %126 = arith.addi %124, %125 : i32
    %c5_i32_57 = arith.constant 5 : i32
    %127 = arith.addi %126, %c5_i32_57 : i32
    %128 = arith.index_cast %127 : i32 to index
    %129 = memref.load %arg2[%128] : memref<64xi32, #tpu.memory_space<smem>>
    %130 = arith.index_cast %129 : i32 to index
    %c0_58 = arith.constant 0 : index
    %131 = vector.load %arg4[%130, %c0_58] : memref<128x128xf32, #tpu.memory_space<vmem>>, vector<1x128xf32>
    %c8_i32_59 = arith.constant 8 : i32
    %132 = arith.muli %83, %c8_i32_59 : i32
    %c8_i32_60 = arith.constant 8 : i32
    %133 = arith.muli %arg0, %c8_i32_60 : i32
    %134 = arith.addi %132, %133 : i32
    %c6_i32_61 = arith.constant 6 : i32
    %135 = arith.addi %134, %c6_i32_61 : i32
    %136 = arith.index_cast %135 : i32 to index
    %137 = memref.load %arg2[%136] : memref<64xi32, #tpu.memory_space<smem>>
    %138 = arith.index_cast %137 : i32 to index
    %c0_62 = arith.constant 0 : index
    %139 = vector.load %arg4[%138, %c0_62] : memref<128x128xf32, #tpu.memory_space<vmem>>, vector<1x128xf32>
    %c8_i32_63 = arith.constant 8 : i32
    %140 = arith.muli %83, %c8_i32_63 : i32
    %c8_i32_64 = arith.constant 8 : i32
    %141 = arith.muli %arg0, %c8_i32_64 : i32
    %142 = arith.addi %140, %141 : i32
    %c7_i32_65 = arith.constant 7 : i32
    %143 = arith.addi %142, %c7_i32_65 : i32
    %144 = arith.index_cast %143 : i32 to index
    %145 = memref.load %arg2[%144] : memref<64xi32, #tpu.memory_space<smem>>
    %146 = arith.index_cast %145 : i32 to index
    %c0_66 = arith.constant 0 : index
    %147 = vector.load %arg4[%146, %c0_66] : memref<128x128xf32, #tpu.memory_space<vmem>>, vector<1x128xf32>
    %148 = tpu.concatenate %91, %99, %107, %115, %123, %131, %139, %147 in 0 : vector<1x128xf32>, vector<1x128xf32>, vector<1x128xf32>, vector<1x128xf32>, vector<1x128xf32>, vector<1x128xf32>, vector<1x128xf32>, vector<1x128xf32> -> vector<8x128xf32>
    %cst_67 = arith.constant dense<0.000000e+00> : vector<8x128xf32>
    %149 = tpu.matmul %78, %3, %cst_67 {dimension_numbers = #tpu.dot_dimension_numbers<[1], [0], [0], [1], [0, 0, 1, 1], [], []>} : vector<8x128xf32>, vector<128x128xf32>, vector<8x128xf32> -> vector<8x128xf32>
    %150 = arith.addf %148, %149 : vector<8x128xf32>
    %151 = arith.addf %150, %6 : vector<8x128xf32>
    %152 = math.tanh %151 : vector<8x128xf32>
    %153 = arith.index_cast %c1_i32_34 : i32 to index
    %c0_68 = arith.constant 0 : index
    %c0_69 = arith.constant 0 : index
    %154 = vector.load %arg7[%153, %c0_68, %c0_69] : memref<8x8x128xf32, #tpu.memory_space<vmem>>, vector<1x8x128xf32>
    %155 = vector.shape_cast %154 : vector<1x8x128xf32> to vector<8x128xf32>
    %156 = vector.shape_cast %152 : vector<8x128xf32> to vector<1x8x128xf32>
    tpu.vector_store %arg7[%153, %c0_68, %c0_69], %156 {strides = array<i32>} : memref<8x8x128xf32, #tpu.memory_space<vmem>>, vector<1x8x128xf32>,
    %c2_i32_70 = arith.constant 2 : i32
    %157 = arith.addi %7, %c2_i32_70 : i32
    %c8_i32_71 = arith.constant 8 : i32
    %158 = arith.muli %157, %c8_i32_71 : i32
    %c8_i32_72 = arith.constant 8 : i32
    %159 = arith.muli %arg0, %c8_i32_72 : i32
    %160 = arith.addi %158, %159 : i32
    %c0_i32_73 = arith.constant 0 : i32
    %161 = arith.addi %160, %c0_i32_73 : i32
    %162 = arith.index_cast %161 : i32 to index
    %163 = memref.load %arg2[%162] : memref<64xi32, #tpu.memory_space<smem>>
    %164 = arith.index_cast %163 : i32 to index
    %c0_74 = arith.constant 0 : index
    %165 = vector.load %arg4[%164, %c0_74] : memref<128x128xf32, #tpu.memory_space<vmem>>, vector<1x128xf32>
    %c8_i32_75 = arith.constant 8 : i32
    %166 = arith.muli %157, %c8_i32_75 : i32
    %c8_i32_76 = arith.constant 8 : i32
    %167 = arith.muli %arg0, %c8_i32_76 : i32
    %168 = arith.addi %166, %167 : i32
    %c1_i32_77 = arith.constant 1 : i32
    %169 = arith.addi %168, %c1_i32_77 : i32
    %170 = arith.index_cast %169 : i32 to index
    %171 = memref.load %arg2[%170] : memref<64xi32, #tpu.memory_space<smem>>
    %172 = arith.index_cast %171 : i32 to index
    %c0_78 = arith.constant 0 : index
    %173 = vector.load %arg4[%172, %c0_78] : memref<128x128xf32, #tpu.memory_space<vmem>>, vector<1x128xf32>
    %c8_i32_79 = arith.constant 8 : i32
    %174 = arith.muli %157, %c8_i32_79 : i32
    %c8_i32_80 = arith.constant 8 : i32
    %175 = arith.muli %arg0, %c8_i32_80 : i32
    %176 = arith.addi %174, %175 : i32
    %c2_i32_81 = arith.constant 2 : i32
    %177 = arith.addi %176, %c2_i32_81 : i32
    %178 = arith.index_cast %177 : i32 to index
    %179 = memref.load %arg2[%178] : memref<64xi32, #tpu.memory_space<smem>>
    %180 = arith.index_cast %179 : i32 to index
    %c0_82 = arith.constant 0 : index
    %181 = vector.load %arg4[%180, %c0_82] : memref<128x128xf32, #tpu.memory_space<vmem>>, vector<1x128xf32>
    %c8_i32_83 = arith.constant 8 : i32
    %182 = arith.muli %157, %c8_i32_83 : i32
    %c8_i32_84 = arith.constant 8 : i32
    %183 = arith.muli %arg0, %c8_i32_84 : i32
    %184 = arith.addi %182, %183 : i32
    %c3_i32_85 = arith.constant 3 : i32
    %185 = arith.addi %184, %c3_i32_85 : i32
    %186 = arith.index_cast %185 : i32 to index
    %187 = memref.load %arg2[%186] : memref<64xi32, #tpu.memory_space<smem>>
    %188 = arith.index_cast %187 : i32 to index
    %c0_86 = arith.constant 0 : index
    %189 = vector.load %arg4[%188, %c0_86] : memref<128x128xf32, #tpu.memory_space<vmem>>, vector<1x128xf32>
    %c8_i32_87 = arith.constant 8 : i32
    %190 = arith.muli %157, %c8_i32_87 : i32
    %c8_i32_88 = arith.constant 8 : i32
    %191 = arith.muli %arg0, %c8_i32_88 : i32
    %192 = arith.addi %190, %191 : i32
    %c4_i32_89 = arith.constant 4 : i32
    %193 = arith.addi %192, %c4_i32_89 : i32
    %194 = arith.index_cast %193 : i32 to index
    %195 = memref.load %arg2[%194] : memref<64xi32, #tpu.memory_space<smem>>
    %196 = arith.index_cast %195 : i32 to index
    %c0_90 = arith.constant 0 : index
    %197 = vector.load %arg4[%196, %c0_90] : memref<128x128xf32, #tpu.memory_space<vmem>>, vector<1x128xf32>
    %c8_i32_91 = arith.constant 8 : i32
    %198 = arith.muli %157, %c8_i32_91 : i32
    %c8_i32_92 = arith.constant 8 : i32
    %199 = arith.muli %arg0, %c8_i32_92 : i32
    %200 = arith.addi %198, %199 : i32
    %c5_i32_93 = arith.constant 5 : i32
    %201 = arith.addi %200, %c5_i32_93 : i32
    %202 = arith.index_cast %201 : i32 to index
    %203 = memref.load %arg2[%202] : memref<64xi32, #tpu.memory_space<smem>>
    %204 = arith.index_cast %203 : i32 to index
    %c0_94 = arith.constant 0 : index
    %205 = vector.load %arg4[%204, %c0_94] : memref<128x128xf32, #tpu.memory_space<vmem>>, vector<1x128xf32>
    %c8_i32_95 = arith.constant 8 : i32
    %206 = arith.muli %157, %c8_i32_95 : i32
    %c8_i32_96 = arith.constant 8 : i32
    %207 = arith.muli %arg0, %c8_i32_96 : i32
    %208 = arith.addi %206, %207 : i32
    %c6_i32_97 = arith.constant 6 : i32
    %209 = arith.addi %208, %c6_i32_97 : i32
    %210 = arith.index_cast %209 : i32 to index
    %211 = memref.load %arg2[%210] : memref<64xi32, #tpu.memory_space<smem>>
    %212 = arith.index_cast %211 : i32 to index
    %c0_98 = arith.constant 0 : index
    %213 = vector.load %arg4[%212, %c0_98] : memref<128x128xf32, #tpu.memory_space<vmem>>, vector<1x128xf32>
    %c8_i32_99 = arith.constant 8 : i32
    %214 = arith.muli %157, %c8_i32_99 : i32
    %c8_i32_100 = arith.constant 8 : i32
    %215 = arith.muli %arg0, %c8_i32_100 : i32
    %216 = arith.addi %214, %215 : i32
    %c7_i32_101 = arith.constant 7 : i32
    %217 = arith.addi %216, %c7_i32_101 : i32
    %218 = arith.index_cast %217 : i32 to index
    %219 = memref.load %arg2[%218] : memref<64xi32, #tpu.memory_space<smem>>
    %220 = arith.index_cast %219 : i32 to index
    %c0_102 = arith.constant 0 : index
    %221 = vector.load %arg4[%220, %c0_102] : memref<128x128xf32, #tpu.memory_space<vmem>>, vector<1x128xf32>
    %222 = tpu.concatenate %165, %173, %181, %189, %197, %205, %213, %221 in 0 : vector<1x128xf32>, vector<1x128xf32>, vector<1x128xf32>, vector<1x128xf32>, vector<1x128xf32>, vector<1x128xf32>, vector<1x128xf32>, vector<1x128xf32> -> vector<8x128xf32>
    %cst_103 = arith.constant dense<0.000000e+00> : vector<8x128xf32>
    %223 = tpu.matmul %152, %3, %cst_103 {dimension_numbers = #tpu.dot_dimension_numbers<[1], [0], [0], [1], [0, 0, 1, 1], [], []>} : vector<8x128xf32>, vector<128x128xf32>, vector<8x128xf32> -> vector<8x128xf32>
    %224 = arith.addf %222, %223 : vector<8x128xf32>
    %225 = arith.addf %224, %6 : vector<8x128xf32>
    %226 = math.tanh %225 : vector<8x128xf32>
    %227 = arith.index_cast %c2_i32_70 : i32 to index
    %c0_104 = arith.constant 0 : index
    %c0_105 = arith.constant 0 : index
    %228 = vector.load %arg7[%227, %c0_104, %c0_105] : memref<8x8x128xf32, #tpu.memory_space<vmem>>, vector<1x8x128xf32>
    %229 = vector.shape_cast %228 : vector<1x8x128xf32> to vector<8x128xf32>
    %230 = vector.shape_cast %226 : vector<8x128xf32> to vector<1x8x128xf32>
    tpu.vector_store %arg7[%227, %c0_104, %c0_105], %230 {strides = array<i32>} : memref<8x8x128xf32, #tpu.memory_space<vmem>>, vector<1x8x128xf32>,
    %c3_i32_106 = arith.constant 3 : i32
    %231 = arith.addi %7, %c3_i32_106 : i32
    %c8_i32_107 = arith.constant 8 : i32
    %232 = arith.muli %231, %c8_i32_107 : i32
    %c8_i32_108 = arith.constant 8 : i32
    %233 = arith.muli %arg0, %c8_i32_108 : i32
    %234 = arith.addi %232, %233 : i32
    %c0_i32_109 = arith.constant 0 : i32
    %235 = arith.addi %234, %c0_i32_109 : i32
    %236 = arith.index_cast %235 : i32 to index
    %237 = memref.load %arg2[%236] : memref<64xi32, #tpu.memory_space<smem>>
    %238 = arith.index_cast %237 : i32 to index
    %c0_110 = arith.constant 0 : index
    %239 = vector.load %arg4[%238, %c0_110] : memref<128x128xf32, #tpu.memory_space<vmem>>, vector<1x128xf32>
    %c8_i32_111 = arith.constant 8 : i32
    %240 = arith.muli %231, %c8_i32_111 : i32
    %c8_i32_112 = arith.constant 8 : i32
    %241 = arith.muli %arg0, %c8_i32_112 : i32
    %242 = arith.addi %240, %241 : i32
    %c1_i32_113 = arith.constant 1 : i32
    %243 = arith.addi %242, %c1_i32_113 : i32
    %244 = arith.index_cast %243 : i32 to index
    %245 = memref.load %arg2[%244] : memref<64xi32, #tpu.memory_space<smem>>
    %246 = arith.index_cast %245 : i32 to index
    %c0_114 = arith.constant 0 : index
    %247 = vector.load %arg4[%246, %c0_114] : memref<128x128xf32, #tpu.memory_space<vmem>>, vector<1x128xf32>
    %c8_i32_115 = arith.constant 8 : i32
    %248 = arith.muli %231, %c8_i32_115 : i32
    %c8_i32_116 = arith.constant 8 : i32
    %249 = arith.muli %arg0, %c8_i32_116 : i32
    %250 = arith.addi %248, %249 : i32
    %c2_i32_117 = arith.constant 2 : i32
    %251 = arith.addi %250, %c2_i32_117 : i32
    %252 = arith.index_cast %251 : i32 to index
    %253 = memref.load %arg2[%252] : memref<64xi32, #tpu.memory_space<smem>>
    %254 = arith.index_cast %253 : i32 to index
    %c0_118 = arith.constant 0 : index
    %255 = vector.load %arg4[%254, %c0_118] : memref<128x128xf32, #tpu.memory_space<vmem>>, vector<1x128xf32>
    %c8_i32_119 = arith.constant 8 : i32
    %256 = arith.muli %231, %c8_i32_119 : i32
    %c8_i32_120 = arith.constant 8 : i32
    %257 = arith.muli %arg0, %c8_i32_120 : i32
    %258 = arith.addi %256, %257 : i32
    %c3_i32_121 = arith.constant 3 : i32
    %259 = arith.addi %258, %c3_i32_121 : i32
    %260 = arith.index_cast %259 : i32 to index
    %261 = memref.load %arg2[%260] : memref<64xi32, #tpu.memory_space<smem>>
    %262 = arith.index_cast %261 : i32 to index
    %c0_122 = arith.constant 0 : index
    %263 = vector.load %arg4[%262, %c0_122] : memref<128x128xf32, #tpu.memory_space<vmem>>, vector<1x128xf32>
    %c8_i32_123 = arith.constant 8 : i32
    %264 = arith.muli %231, %c8_i32_123 : i32
    %c8_i32_124 = arith.constant 8 : i32
    %265 = arith.muli %arg0, %c8_i32_124 : i32
    %266 = arith.addi %264, %265 : i32
    %c4_i32_125 = arith.constant 4 : i32
    %267 = arith.addi %266, %c4_i32_125 : i32
    %268 = arith.index_cast %267 : i32 to index
    %269 = memref.load %arg2[%268] : memref<64xi32, #tpu.memory_space<smem>>
    %270 = arith.index_cast %269 : i32 to index
    %c0_126 = arith.constant 0 : index
    %271 = vector.load %arg4[%270, %c0_126] : memref<128x128xf32, #tpu.memory_space<vmem>>, vector<1x128xf32>
    %c8_i32_127 = arith.constant 8 : i32
    %272 = arith.muli %231, %c8_i32_127 : i32
    %c8_i32_128 = arith.constant 8 : i32
    %273 = arith.muli %arg0, %c8_i32_128 : i32
    %274 = arith.addi %272, %273 : i32
    %c5_i32_129 = arith.constant 5 : i32
    %275 = arith.addi %274, %c5_i32_129 : i32
    %276 = arith.index_cast %275 : i32 to index
    %277 = memref.load %arg2[%276] : memref<64xi32, #tpu.memory_space<smem>>
    %278 = arith.index_cast %277 : i32 to index
    %c0_130 = arith.constant 0 : index
    %279 = vector.load %arg4[%278, %c0_130] : memref<128x128xf32, #tpu.memory_space<vmem>>, vector<1x128xf32>
    %c8_i32_131 = arith.constant 8 : i32
    %280 = arith.muli %231, %c8_i32_131 : i32
    %c8_i32_132 = arith.constant 8 : i32
    %281 = arith.muli %arg0, %c8_i32_132 : i32
    %282 = arith.addi %280, %281 : i32
    %c6_i32_133 = arith.constant 6 : i32
    %283 = arith.addi %282, %c6_i32_133 : i32
    %284 = arith.index_cast %283 : i32 to index
    %285 = memref.load %arg2[%284] : memref<64xi32, #tpu.memory_space<smem>>
    %286 = arith.index_cast %285 : i32 to index
    %c0_134 = arith.constant 0 : index
    %287 = vector.load %arg4[%286, %c0_134] : memref<128x128xf32, #tpu.memory_space<vmem>>, vector<1x128xf32>
    %c8_i32_135 = arith.constant 8 : i32
    %288 = arith.muli %231, %c8_i32_135 : i32
    %c8_i32_136 = arith.constant 8 : i32
    %289 = arith.muli %arg0, %c8_i32_136 : i32
    %290 = arith.addi %288, %289 : i32
    %c7_i32_137 = arith.constant 7 : i32
    %291 = arith.addi %290, %c7_i32_137 : i32
    %292 = arith.index_cast %291 : i32 to index
    %293 = memref.load %arg2[%292] : memref<64xi32, #tpu.memory_space<smem>>
    %294 = arith.index_cast %293 : i32 to index
    %c0_138 = arith.constant 0 : index
    %295 = vector.load %arg4[%294, %c0_138] : memref<128x128xf32, #tpu.memory_space<vmem>>, vector<1x128xf32>
    %296 = tpu.concatenate %239, %247, %255, %263, %271, %279, %287, %295 in 0 : vector<1x128xf32>, vector<1x128xf32>, vector<1x128xf32>, vector<1x128xf32>, vector<1x128xf32>, vector<1x128xf32>, vector<1x128xf32>, vector<1x128xf32> -> vector<8x128xf32>
    %cst_139 = arith.constant dense<0.000000e+00> : vector<8x128xf32>
    %297 = tpu.matmul %226, %3, %cst_139 {dimension_numbers = #tpu.dot_dimension_numbers<[1], [0], [0], [1], [0, 0, 1, 1], [], []>} : vector<8x128xf32>, vector<128x128xf32>, vector<8x128xf32> -> vector<8x128xf32>
    %298 = arith.addf %296, %297 : vector<8x128xf32>
    %299 = arith.addf %298, %6 : vector<8x128xf32>
    %300 = math.tanh %299 : vector<8x128xf32>
    %301 = arith.index_cast %c3_i32_106 : i32 to index
    %c0_140 = arith.constant 0 : index
    %c0_141 = arith.constant 0 : index
    %302 = vector.load %arg7[%301, %c0_140, %c0_141] : memref<8x8x128xf32, #tpu.memory_space<vmem>>, vector<1x8x128xf32>
    %303 = vector.shape_cast %302 : vector<1x8x128xf32> to vector<8x128xf32>
    %304 = vector.shape_cast %300 : vector<8x128xf32> to vector<1x8x128xf32>
    tpu.vector_store %arg7[%301, %c0_140, %c0_141], %304 {strides = array<i32>} : memref<8x8x128xf32, #tpu.memory_space<vmem>>, vector<1x8x128xf32>,
    %c4_i32_142 = arith.constant 4 : i32
    %305 = arith.addi %7, %c4_i32_142 : i32
    %c8_i32_143 = arith.constant 8 : i32
    %306 = arith.muli %305, %c8_i32_143 : i32
    %c8_i32_144 = arith.constant 8 : i32
    %307 = arith.muli %arg0, %c8_i32_144 : i32
    %308 = arith.addi %306, %307 : i32
    %c0_i32_145 = arith.constant 0 : i32
    %309 = arith.addi %308, %c0_i32_145 : i32
    %310 = arith.index_cast %309 : i32 to index
    %311 = memref.load %arg2[%310] : memref<64xi32, #tpu.memory_space<smem>>
    %312 = arith.index_cast %311 : i32 to index
    %c0_146 = arith.constant 0 : index
    %313 = vector.load %arg4[%312, %c0_146] : memref<128x128xf32, #tpu.memory_space<vmem>>, vector<1x128xf32>
    %c8_i32_147 = arith.constant 8 : i32
    %314 = arith.muli %305, %c8_i32_147 : i32
    %c8_i32_148 = arith.constant 8 : i32
    %315 = arith.muli %arg0, %c8_i32_148 : i32
    %316 = arith.addi %314, %315 : i32
    %c1_i32_149 = arith.constant 1 : i32
    %317 = arith.addi %316, %c1_i32_149 : i32
    %318 = arith.index_cast %317 : i32 to index
    %319 = memref.load %arg2[%318] : memref<64xi32, #tpu.memory_space<smem>>
    %320 = arith.index_cast %319 : i32 to index
    %c0_150 = arith.constant 0 : index
    %321 = vector.load %arg4[%320, %c0_150] : memref<128x128xf32, #tpu.memory_space<vmem>>, vector<1x128xf32>
    %c8_i32_151 = arith.constant 8 : i32
    %322 = arith.muli %305, %c8_i32_151 : i32
    %c8_i32_152 = arith.constant 8 : i32
    %323 = arith.muli %arg0, %c8_i32_152 : i32
    %324 = arith.addi %322, %323 : i32
    %c2_i32_153 = arith.constant 2 : i32
    %325 = arith.addi %324, %c2_i32_153 : i32
    %326 = arith.index_cast %325 : i32 to index
    %327 = memref.load %arg2[%326] : memref<64xi32, #tpu.memory_space<smem>>
    %328 = arith.index_cast %327 : i32 to index
    %c0_154 = arith.constant 0 : index
    %329 = vector.load %arg4[%328, %c0_154] : memref<128x128xf32, #tpu.memory_space<vmem>>, vector<1x128xf32>
    %c8_i32_155 = arith.constant 8 : i32
    %330 = arith.muli %305, %c8_i32_155 : i32
    %c8_i32_156 = arith.constant 8 : i32
    %331 = arith.muli %arg0, %c8_i32_156 : i32
    %332 = arith.addi %330, %331 : i32
    %c3_i32_157 = arith.constant 3 : i32
    %333 = arith.addi %332, %c3_i32_157 : i32
    %334 = arith.index_cast %333 : i32 to index
    %335 = memref.load %arg2[%334] : memref<64xi32, #tpu.memory_space<smem>>
    %336 = arith.index_cast %335 : i32 to index
    %c0_158 = arith.constant 0 : index
    %337 = vector.load %arg4[%336, %c0_158] : memref<128x128xf32, #tpu.memory_space<vmem>>, vector<1x128xf32>
    %c8_i32_159 = arith.constant 8 : i32
    %338 = arith.muli %305, %c8_i32_159 : i32
    %c8_i32_160 = arith.constant 8 : i32
    %339 = arith.muli %arg0, %c8_i32_160 : i32
    %340 = arith.addi %338, %339 : i32
    %c4_i32_161 = arith.constant 4 : i32
    %341 = arith.addi %340, %c4_i32_161 : i32
    %342 = arith.index_cast %341 : i32 to index
    %343 = memref.load %arg2[%342] : memref<64xi32, #tpu.memory_space<smem>>
    %344 = arith.index_cast %343 : i32 to index
    %c0_162 = arith.constant 0 : index
    %345 = vector.load %arg4[%344, %c0_162] : memref<128x128xf32, #tpu.memory_space<vmem>>, vector<1x128xf32>
    %c8_i32_163 = arith.constant 8 : i32
    %346 = arith.muli %305, %c8_i32_163 : i32
    %c8_i32_164 = arith.constant 8 : i32
    %347 = arith.muli %arg0, %c8_i32_164 : i32
    %348 = arith.addi %346, %347 : i32
    %c5_i32_165 = arith.constant 5 : i32
    %349 = arith.addi %348, %c5_i32_165 : i32
    %350 = arith.index_cast %349 : i32 to index
    %351 = memref.load %arg2[%350] : memref<64xi32, #tpu.memory_space<smem>>
    %352 = arith.index_cast %351 : i32 to index
    %c0_166 = arith.constant 0 : index
    %353 = vector.load %arg4[%352, %c0_166] : memref<128x128xf32, #tpu.memory_space<vmem>>, vector<1x128xf32>
    %c8_i32_167 = arith.constant 8 : i32
    %354 = arith.muli %305, %c8_i32_167 : i32
    %c8_i32_168 = arith.constant 8 : i32
    %355 = arith.muli %arg0, %c8_i32_168 : i32
    %356 = arith.addi %354, %355 : i32
    %c6_i32_169 = arith.constant 6 : i32
    %357 = arith.addi %356, %c6_i32_169 : i32
    %358 = arith.index_cast %357 : i32 to index
    %359 = memref.load %arg2[%358] : memref<64xi32, #tpu.memory_space<smem>>
    %360 = arith.index_cast %359 : i32 to index
    %c0_170 = arith.constant 0 : index
    %361 = vector.load %arg4[%360, %c0_170] : memref<128x128xf32, #tpu.memory_space<vmem>>, vector<1x128xf32>
    %c8_i32_171 = arith.constant 8 : i32
    %362 = arith.muli %305, %c8_i32_171 : i32
    %c8_i32_172 = arith.constant 8 : i32
    %363 = arith.muli %arg0, %c8_i32_172 : i32
    %364 = arith.addi %362, %363 : i32
    %c7_i32_173 = arith.constant 7 : i32
    %365 = arith.addi %364, %c7_i32_173 : i32
    %366 = arith.index_cast %365 : i32 to index
    %367 = memref.load %arg2[%366] : memref<64xi32, #tpu.memory_space<smem>>
    %368 = arith.index_cast %367 : i32 to index
    %c0_174 = arith.constant 0 : index
    %369 = vector.load %arg4[%368, %c0_174] : memref<128x128xf32, #tpu.memory_space<vmem>>, vector<1x128xf32>
    %370 = tpu.concatenate %313, %321, %329, %337, %345, %353, %361, %369 in 0 : vector<1x128xf32>, vector<1x128xf32>, vector<1x128xf32>, vector<1x128xf32>, vector<1x128xf32>, vector<1x128xf32>, vector<1x128xf32>, vector<1x128xf32> -> vector<8x128xf32>
    %cst_175 = arith.constant dense<0.000000e+00> : vector<8x128xf32>
    %371 = tpu.matmul %300, %3, %cst_175 {dimension_numbers = #tpu.dot_dimension_numbers<[1], [0], [0], [1], [0, 0, 1, 1], [], []>} : vector<8x128xf32>, vector<128x128xf32>, vector<8x128xf32> -> vector<8x128xf32>
    %372 = arith.addf %370, %371 : vector<8x128xf32>
    %373 = arith.addf %372, %6 : vector<8x128xf32>
    %374 = math.tanh %373 : vector<8x128xf32>
    %375 = arith.index_cast %c4_i32_142 : i32 to index
    %c0_176 = arith.constant 0 : index
    %c0_177 = arith.constant 0 : index
    %376 = vector.load %arg7[%375, %c0_176, %c0_177] : memref<8x8x128xf32, #tpu.memory_space<vmem>>, vector<1x8x128xf32>
    %377 = vector.shape_cast %376 : vector<1x8x128xf32> to vector<8x128xf32>
    %378 = vector.shape_cast %374 : vector<8x128xf32> to vector<1x8x128xf32>
    tpu.vector_store %arg7[%375, %c0_176, %c0_177], %378 {strides = array<i32>} : memref<8x8x128xf32, #tpu.memory_space<vmem>>, vector<1x8x128xf32>,
    %c5_i32_178 = arith.constant 5 : i32
    %379 = arith.addi %7, %c5_i32_178 : i32
    %c8_i32_179 = arith.constant 8 : i32
    %380 = arith.muli %379, %c8_i32_179 : i32
    %c8_i32_180 = arith.constant 8 : i32
    %381 = arith.muli %arg0, %c8_i32_180 : i32
    %382 = arith.addi %380, %381 : i32
    %c0_i32_181 = arith.constant 0 : i32
    %383 = arith.addi %382, %c0_i32_181 : i32
    %384 = arith.index_cast %383 : i32 to index
    %385 = memref.load %arg2[%384] : memref<64xi32, #tpu.memory_space<smem>>
    %386 = arith.index_cast %385 : i32 to index
    %c0_182 = arith.constant 0 : index
    %387 = vector.load %arg4[%386, %c0_182] : memref<128x128xf32, #tpu.memory_space<vmem>>, vector<1x128xf32>
    %c8_i32_183 = arith.constant 8 : i32
    %388 = arith.muli %379, %c8_i32_183 : i32
    %c8_i32_184 = arith.constant 8 : i32
    %389 = arith.muli %arg0, %c8_i32_184 : i32
    %390 = arith.addi %388, %389 : i32
    %c1_i32_185 = arith.constant 1 : i32
    %391 = arith.addi %390, %c1_i32_185 : i32
    %392 = arith.index_cast %391 : i32 to index
    %393 = memref.load %arg2[%392] : memref<64xi32, #tpu.memory_space<smem>>
    %394 = arith.index_cast %393 : i32 to index
    %c0_186 = arith.constant 0 : index
    %395 = vector.load %arg4[%394, %c0_186] : memref<128x128xf32, #tpu.memory_space<vmem>>, vector<1x128xf32>
    %c8_i32_187 = arith.constant 8 : i32
    %396 = arith.muli %379, %c8_i32_187 : i32
    %c8_i32_188 = arith.constant 8 : i32
    %397 = arith.muli %arg0, %c8_i32_188 : i32
    %398 = arith.addi %396, %397 : i32
    %c2_i32_189 = arith.constant 2 : i32
    %399 = arith.addi %398, %c2_i32_189 : i32
    %400 = arith.index_cast %399 : i32 to index
    %401 = memref.load %arg2[%400] : memref<64xi32, #tpu.memory_space<smem>>
    %402 = arith.index_cast %401 : i32 to index
    %c0_190 = arith.constant 0 : index
    %403 = vector.load %arg4[%402, %c0_190] : memref<128x128xf32, #tpu.memory_space<vmem>>, vector<1x128xf32>
    %c8_i32_191 = arith.constant 8 : i32
    %404 = arith.muli %379, %c8_i32_191 : i32
    %c8_i32_192 = arith.constant 8 : i32
    %405 = arith.muli %arg0, %c8_i32_192 : i32
    %406 = arith.addi %404, %405 : i32
    %c3_i32_193 = arith.constant 3 : i32
    %407 = arith.addi %406, %c3_i32_193 : i32
    %408 = arith.index_cast %407 : i32 to index
    %409 = memref.load %arg2[%408] : memref<64xi32, #tpu.memory_space<smem>>
    %410 = arith.index_cast %409 : i32 to index
    %c0_194 = arith.constant 0 : index
    %411 = vector.load %arg4[%410, %c0_194] : memref<128x128xf32, #tpu.memory_space<vmem>>, vector<1x128xf32>
    %c8_i32_195 = arith.constant 8 : i32
    %412 = arith.muli %379, %c8_i32_195 : i32
    %c8_i32_196 = arith.constant 8 : i32
    %413 = arith.muli %arg0, %c8_i32_196 : i32
    %414 = arith.addi %412, %413 : i32
    %c4_i32_197 = arith.constant 4 : i32
    %415 = arith.addi %414, %c4_i32_197 : i32
    %416 = arith.index_cast %415 : i32 to index
    %417 = memref.load %arg2[%416] : memref<64xi32, #tpu.memory_space<smem>>
    %418 = arith.index_cast %417 : i32 to index
    %c0_198 = arith.constant 0 : index
    %419 = vector.load %arg4[%418, %c0_198] : memref<128x128xf32, #tpu.memory_space<vmem>>, vector<1x128xf32>
    %c8_i32_199 = arith.constant 8 : i32
    %420 = arith.muli %379, %c8_i32_199 : i32
    %c8_i32_200 = arith.constant 8 : i32
    %421 = arith.muli %arg0, %c8_i32_200 : i32
    %422 = arith.addi %420, %421 : i32
    %c5_i32_201 = arith.constant 5 : i32
    %423 = arith.addi %422, %c5_i32_201 : i32
    %424 = arith.index_cast %423 : i32 to index
    %425 = memref.load %arg2[%424] : memref<64xi32, #tpu.memory_space<smem>>
    %426 = arith.index_cast %425 : i32 to index
    %c0_202 = arith.constant 0 : index
    %427 = vector.load %arg4[%426, %c0_202] : memref<128x128xf32, #tpu.memory_space<vmem>>, vector<1x128xf32>
    %c8_i32_203 = arith.constant 8 : i32
    %428 = arith.muli %379, %c8_i32_203 : i32
    %c8_i32_204 = arith.constant 8 : i32
    %429 = arith.muli %arg0, %c8_i32_204 : i32
    %430 = arith.addi %428, %429 : i32
    %c6_i32_205 = arith.constant 6 : i32
    %431 = arith.addi %430, %c6_i32_205 : i32
    %432 = arith.index_cast %431 : i32 to index
    %433 = memref.load %arg2[%432] : memref<64xi32, #tpu.memory_space<smem>>
    %434 = arith.index_cast %433 : i32 to index
    %c0_206 = arith.constant 0 : index
    %435 = vector.load %arg4[%434, %c0_206] : memref<128x128xf32, #tpu.memory_space<vmem>>, vector<1x128xf32>
    %c8_i32_207 = arith.constant 8 : i32
    %436 = arith.muli %379, %c8_i32_207 : i32
    %c8_i32_208 = arith.constant 8 : i32
    %437 = arith.muli %arg0, %c8_i32_208 : i32
    %438 = arith.addi %436, %437 : i32
    %c7_i32_209 = arith.constant 7 : i32
    %439 = arith.addi %438, %c7_i32_209 : i32
    %440 = arith.index_cast %439 : i32 to index
    %441 = memref.load %arg2[%440] : memref<64xi32, #tpu.memory_space<smem>>
    %442 = arith.index_cast %441 : i32 to index
    %c0_210 = arith.constant 0 : index
    %443 = vector.load %arg4[%442, %c0_210] : memref<128x128xf32, #tpu.memory_space<vmem>>, vector<1x128xf32>
    %444 = tpu.concatenate %387, %395, %403, %411, %419, %427, %435, %443 in 0 : vector<1x128xf32>, vector<1x128xf32>, vector<1x128xf32>, vector<1x128xf32>, vector<1x128xf32>, vector<1x128xf32>, vector<1x128xf32>, vector<1x128xf32> -> vector<8x128xf32>
    %cst_211 = arith.constant dense<0.000000e+00> : vector<8x128xf32>
    %445 = tpu.matmul %374, %3, %cst_211 {dimension_numbers = #tpu.dot_dimension_numbers<[1], [0], [0], [1], [0, 0, 1, 1], [], []>} : vector<8x128xf32>, vector<128x128xf32>, vector<8x128xf32> -> vector<8x128xf32>
    %446 = arith.addf %444, %445 : vector<8x128xf32>
    %447 = arith.addf %446, %6 : vector<8x128xf32>
    %448 = math.tanh %447 : vector<8x128xf32>
    %449 = arith.index_cast %c5_i32_178 : i32 to index
    %c0_212 = arith.constant 0 : index
    %c0_213 = arith.constant 0 : index
    %450 = vector.load %arg7[%449, %c0_212, %c0_213] : memref<8x8x128xf32, #tpu.memory_space<vmem>>, vector<1x8x128xf32>
    %451 = vector.shape_cast %450 : vector<1x8x128xf32> to vector<8x128xf32>
    %452 = vector.shape_cast %448 : vector<8x128xf32> to vector<1x8x128xf32>
    tpu.vector_store %arg7[%449, %c0_212, %c0_213], %452 {strides = array<i32>} : memref<8x8x128xf32, #tpu.memory_space<vmem>>, vector<1x8x128xf32>,
    %c6_i32_214 = arith.constant 6 : i32
    %453 = arith.addi %7, %c6_i32_214 : i32
    %c8_i32_215 = arith.constant 8 : i32
    %454 = arith.muli %453, %c8_i32_215 : i32
    %c8_i32_216 = arith.constant 8 : i32
    %455 = arith.muli %arg0, %c8_i32_216 : i32
    %456 = arith.addi %454, %455 : i32
    %c0_i32_217 = arith.constant 0 : i32
    %457 = arith.addi %456, %c0_i32_217 : i32
    %458 = arith.index_cast %457 : i32 to index
    %459 = memref.load %arg2[%458] : memref<64xi32, #tpu.memory_space<smem>>
    %460 = arith.index_cast %459 : i32 to index
    %c0_218 = arith.constant 0 : index
    %461 = vector.load %arg4[%460, %c0_218] : memref<128x128xf32, #tpu.memory_space<vmem>>, vector<1x128xf32>
    %c8_i32_219 = arith.constant 8 : i32
    %462 = arith.muli %453, %c8_i32_219 : i32
    %c8_i32_220 = arith.constant 8 : i32
    %463 = arith.muli %arg0, %c8_i32_220 : i32
    %464 = arith.addi %462, %463 : i32
    %c1_i32_221 = arith.constant 1 : i32
    %465 = arith.addi %464, %c1_i32_221 : i32
    %466 = arith.index_cast %465 : i32 to index
    %467 = memref.load %arg2[%466] : memref<64xi32, #tpu.memory_space<smem>>
    %468 = arith.index_cast %467 : i32 to index
    %c0_222 = arith.constant 0 : index
    %469 = vector.load %arg4[%468, %c0_222] : memref<128x128xf32, #tpu.memory_space<vmem>>, vector<1x128xf32>
    %c8_i32_223 = arith.constant 8 : i32
    %470 = arith.muli %453, %c8_i32_223 : i32
    %c8_i32_224 = arith.constant 8 : i32
    %471 = arith.muli %arg0, %c8_i32_224 : i32
    %472 = arith.addi %470, %471 : i32
    %c2_i32_225 = arith.constant 2 : i32
    %473 = arith.addi %472, %c2_i32_225 : i32
    %474 = arith.index_cast %473 : i32 to index
    %475 = memref.load %arg2[%474] : memref<64xi32, #tpu.memory_space<smem>>
    %476 = arith.index_cast %475 : i32 to index
    %c0_226 = arith.constant 0 : index
    %477 = vector.load %arg4[%476, %c0_226] : memref<128x128xf32, #tpu.memory_space<vmem>>, vector<1x128xf32>
    %c8_i32_227 = arith.constant 8 : i32
    %478 = arith.muli %453, %c8_i32_227 : i32
    %c8_i32_228 = arith.constant 8 : i32
    %479 = arith.muli %arg0, %c8_i32_228 : i32
    %480 = arith.addi %478, %479 : i32
    %c3_i32_229 = arith.constant 3 : i32
    %481 = arith.addi %480, %c3_i32_229 : i32
    %482 = arith.index_cast %481 : i32 to index
    %483 = memref.load %arg2[%482] : memref<64xi32, #tpu.memory_space<smem>>
    %484 = arith.index_cast %483 : i32 to index
    %c0_230 = arith.constant 0 : index
    %485 = vector.load %arg4[%484, %c0_230] : memref<128x128xf32, #tpu.memory_space<vmem>>, vector<1x128xf32>
    %c8_i32_231 = arith.constant 8 : i32
    %486 = arith.muli %453, %c8_i32_231 : i32
    %c8_i32_232 = arith.constant 8 : i32
    %487 = arith.muli %arg0, %c8_i32_232 : i32
    %488 = arith.addi %486, %487 : i32
    %c4_i32_233 = arith.constant 4 : i32
    %489 = arith.addi %488, %c4_i32_233 : i32
    %490 = arith.index_cast %489 : i32 to index
    %491 = memref.load %arg2[%490] : memref<64xi32, #tpu.memory_space<smem>>
    %492 = arith.index_cast %491 : i32 to index
    %c0_234 = arith.constant 0 : index
    %493 = vector.load %arg4[%492, %c0_234] : memref<128x128xf32, #tpu.memory_space<vmem>>, vector<1x128xf32>
    %c8_i32_235 = arith.constant 8 : i32
    %494 = arith.muli %453, %c8_i32_235 : i32
    %c8_i32_236 = arith.constant 8 : i32
    %495 = arith.muli %arg0, %c8_i32_236 : i32
    %496 = arith.addi %494, %495 : i32
    %c5_i32_237 = arith.constant 5 : i32
    %497 = arith.addi %496, %c5_i32_237 : i32
    %498 = arith.index_cast %497 : i32 to index
    %499 = memref.load %arg2[%498] : memref<64xi32, #tpu.memory_space<smem>>
    %500 = arith.index_cast %499 : i32 to index
    %c0_238 = arith.constant 0 : index
    %501 = vector.load %arg4[%500, %c0_238] : memref<128x128xf32, #tpu.memory_space<vmem>>, vector<1x128xf32>
    %c8_i32_239 = arith.constant 8 : i32
    %502 = arith.muli %453, %c8_i32_239 : i32
    %c8_i32_240 = arith.constant 8 : i32
    %503 = arith.muli %arg0, %c8_i32_240 : i32
    %504 = arith.addi %502, %503 : i32
    %c6_i32_241 = arith.constant 6 : i32
    %505 = arith.addi %504, %c6_i32_241 : i32
    %506 = arith.index_cast %505 : i32 to index
    %507 = memref.load %arg2[%506] : memref<64xi32, #tpu.memory_space<smem>>
    %508 = arith.index_cast %507 : i32 to index
    %c0_242 = arith.constant 0 : index
    %509 = vector.load %arg4[%508, %c0_242] : memref<128x128xf32, #tpu.memory_space<vmem>>, vector<1x128xf32>
    %c8_i32_243 = arith.constant 8 : i32
    %510 = arith.muli %453, %c8_i32_243 : i32
    %c8_i32_244 = arith.constant 8 : i32
    %511 = arith.muli %arg0, %c8_i32_244 : i32
    %512 = arith.addi %510, %511 : i32
    %c7_i32_245 = arith.constant 7 : i32
    %513 = arith.addi %512, %c7_i32_245 : i32
    %514 = arith.index_cast %513 : i32 to index
    %515 = memref.load %arg2[%514] : memref<64xi32, #tpu.memory_space<smem>>
    %516 = arith.index_cast %515 : i32 to index
    %c0_246 = arith.constant 0 : index
    %517 = vector.load %arg4[%516, %c0_246] : memref<128x128xf32, #tpu.memory_space<vmem>>, vector<1x128xf32>
    %518 = tpu.concatenate %461, %469, %477, %485, %493, %501, %509, %517 in 0 : vector<1x128xf32>, vector<1x128xf32>, vector<1x128xf32>, vector<1x128xf32>, vector<1x128xf32>, vector<1x128xf32>, vector<1x128xf32>, vector<1x128xf32> -> vector<8x128xf32>
    %cst_247 = arith.constant dense<0.000000e+00> : vector<8x128xf32>
    %519 = tpu.matmul %448, %3, %cst_247 {dimension_numbers = #tpu.dot_dimension_numbers<[1], [0], [0], [1], [0, 0, 1, 1], [], []>} : vector<8x128xf32>, vector<128x128xf32>, vector<8x128xf32> -> vector<8x128xf32>
    %520 = arith.addf %518, %519 : vector<8x128xf32>
    %521 = arith.addf %520, %6 : vector<8x128xf32>
    %522 = math.tanh %521 : vector<8x128xf32>
    %523 = arith.index_cast %c6_i32_214 : i32 to index
    %c0_248 = arith.constant 0 : index
    %c0_249 = arith.constant 0 : index
    %524 = vector.load %arg7[%523, %c0_248, %c0_249] : memref<8x8x128xf32, #tpu.memory_space<vmem>>, vector<1x8x128xf32>
    %525 = vector.shape_cast %524 : vector<1x8x128xf32> to vector<8x128xf32>
    %526 = vector.shape_cast %522 : vector<8x128xf32> to vector<1x8x128xf32>
    tpu.vector_store %arg7[%523, %c0_248, %c0_249], %526 {strides = array<i32>} : memref<8x8x128xf32, #tpu.memory_space<vmem>>, vector<1x8x128xf32>,
    %c7_i32_250 = arith.constant 7 : i32
    %527 = arith.addi %7, %c7_i32_250 : i32
    %c8_i32_251 = arith.constant 8 : i32
    %528 = arith.muli %527, %c8_i32_251 : i32
    %c8_i32_252 = arith.constant 8 : i32
    %529 = arith.muli %arg0, %c8_i32_252 : i32
    %530 = arith.addi %528, %529 : i32
    %c0_i32_253 = arith.constant 0 : i32
    %531 = arith.addi %530, %c0_i32_253 : i32
    %532 = arith.index_cast %531 : i32 to index
    %533 = memref.load %arg2[%532] : memref<64xi32, #tpu.memory_space<smem>>
    %534 = arith.index_cast %533 : i32 to index
    %c0_254 = arith.constant 0 : index
    %535 = vector.load %arg4[%534, %c0_254] : memref<128x128xf32, #tpu.memory_space<vmem>>, vector<1x128xf32>
    %c8_i32_255 = arith.constant 8 : i32
    %536 = arith.muli %527, %c8_i32_255 : i32
    %c8_i32_256 = arith.constant 8 : i32
    %537 = arith.muli %arg0, %c8_i32_256 : i32
    %538 = arith.addi %536, %537 : i32
    %c1_i32_257 = arith.constant 1 : i32
    %539 = arith.addi %538, %c1_i32_257 : i32
    %540 = arith.index_cast %539 : i32 to index
    %541 = memref.load %arg2[%540] : memref<64xi32, #tpu.memory_space<smem>>
    %542 = arith.index_cast %541 : i32 to index
    %c0_258 = arith.constant 0 : index
    %543 = vector.load %arg4[%542, %c0_258] : memref<128x128xf32, #tpu.memory_space<vmem>>, vector<1x128xf32>
    %c8_i32_259 = arith.constant 8 : i32
    %544 = arith.muli %527, %c8_i32_259 : i32
    %c8_i32_260 = arith.constant 8 : i32
    %545 = arith.muli %arg0, %c8_i32_260 : i32
    %546 = arith.addi %544, %545 : i32
    %c2_i32_261 = arith.constant 2 : i32
    %547 = arith.addi %546, %c2_i32_261 : i32
    %548 = arith.index_cast %547 : i32 to index
    %549 = memref.load %arg2[%548] : memref<64xi32, #tpu.memory_space<smem>>
    %550 = arith.index_cast %549 : i32 to index
    %c0_262 = arith.constant 0 : index
    %551 = vector.load %arg4[%550, %c0_262] : memref<128x128xf32, #tpu.memory_space<vmem>>, vector<1x128xf32>
    %c8_i32_263 = arith.constant 8 : i32
    %552 = arith.muli %527, %c8_i32_263 : i32
    %c8_i32_264 = arith.constant 8 : i32
    %553 = arith.muli %arg0, %c8_i32_264 : i32
    %554 = arith.addi %552, %553 : i32
    %c3_i32_265 = arith.constant 3 : i32
    %555 = arith.addi %554, %c3_i32_265 : i32
    %556 = arith.index_cast %555 : i32 to index
    %557 = memref.load %arg2[%556] : memref<64xi32, #tpu.memory_space<smem>>
    %558 = arith.index_cast %557 : i32 to index
    %c0_266 = arith.constant 0 : index
    %559 = vector.load %arg4[%558, %c0_266] : memref<128x128xf32, #tpu.memory_space<vmem>>, vector<1x128xf32>
    %c8_i32_267 = arith.constant 8 : i32
    %560 = arith.muli %527, %c8_i32_267 : i32
    %c8_i32_268 = arith.constant 8 : i32
    %561 = arith.muli %arg0, %c8_i32_268 : i32
    %562 = arith.addi %560, %561 : i32
    %c4_i32_269 = arith.constant 4 : i32
    %563 = arith.addi %562, %c4_i32_269 : i32
    %564 = arith.index_cast %563 : i32 to index
    %565 = memref.load %arg2[%564] : memref<64xi32, #tpu.memory_space<smem>>
    %566 = arith.index_cast %565 : i32 to index
    %c0_270 = arith.constant 0 : index
    %567 = vector.load %arg4[%566, %c0_270] : memref<128x128xf32, #tpu.memory_space<vmem>>, vector<1x128xf32>
    %c8_i32_271 = arith.constant 8 : i32
    %568 = arith.muli %527, %c8_i32_271 : i32
    %c8_i32_272 = arith.constant 8 : i32
    %569 = arith.muli %arg0, %c8_i32_272 : i32
    %570 = arith.addi %568, %569 : i32
    %c5_i32_273 = arith.constant 5 : i32
    %571 = arith.addi %570, %c5_i32_273 : i32
    %572 = arith.index_cast %571 : i32 to index
    %573 = memref.load %arg2[%572] : memref<64xi32, #tpu.memory_space<smem>>
    %574 = arith.index_cast %573 : i32 to index
    %c0_274 = arith.constant 0 : index
    %575 = vector.load %arg4[%574, %c0_274] : memref<128x128xf32, #tpu.memory_space<vmem>>, vector<1x128xf32>
    %c8_i32_275 = arith.constant 8 : i32
    %576 = arith.muli %527, %c8_i32_275 : i32
    %c8_i32_276 = arith.constant 8 : i32
    %577 = arith.muli %arg0, %c8_i32_276 : i32
    %578 = arith.addi %576, %577 : i32
    %c6_i32_277 = arith.constant 6 : i32
    %579 = arith.addi %578, %c6_i32_277 : i32
    %580 = arith.index_cast %579 : i32 to index
    %581 = memref.load %arg2[%580] : memref<64xi32, #tpu.memory_space<smem>>
    %582 = arith.index_cast %581 : i32 to index
    %c0_278 = arith.constant 0 : index
    %583 = vector.load %arg4[%582, %c0_278] : memref<128x128xf32, #tpu.memory_space<vmem>>, vector<1x128xf32>
    %c8_i32_279 = arith.constant 8 : i32
    %584 = arith.muli %527, %c8_i32_279 : i32
    %c8_i32_280 = arith.constant 8 : i32
    %585 = arith.muli %arg0, %c8_i32_280 : i32
    %586 = arith.addi %584, %585 : i32
    %c7_i32_281 = arith.constant 7 : i32
    %587 = arith.addi %586, %c7_i32_281 : i32
    %588 = arith.index_cast %587 : i32 to index
    %589 = memref.load %arg2[%588] : memref<64xi32, #tpu.memory_space<smem>>
    %590 = arith.index_cast %589 : i32 to index
    %c0_282 = arith.constant 0 : index
    %591 = vector.load %arg4[%590, %c0_282] : memref<128x128xf32, #tpu.memory_space<vmem>>, vector<1x128xf32>
    %592 = tpu.concatenate %535, %543, %551, %559, %567, %575, %583, %591 in 0 : vector<1x128xf32>, vector<1x128xf32>, vector<1x128xf32>, vector<1x128xf32>, vector<1x128xf32>, vector<1x128xf32>, vector<1x128xf32>, vector<1x128xf32> -> vector<8x128xf32>
    %cst_283 = arith.constant dense<0.000000e+00> : vector<8x128xf32>
    %593 = tpu.matmul %522, %3, %cst_283 {dimension_numbers = #tpu.dot_dimension_numbers<[1], [0], [0], [1], [0, 0, 1, 1], [], []>} : vector<8x128xf32>, vector<128x128xf32>, vector<8x128xf32> -> vector<8x128xf32>
    %594 = arith.addf %592, %593 : vector<8x128xf32>
    %595 = arith.addf %594, %6 : vector<8x128xf32>
    %596 = math.tanh %595 : vector<8x128xf32>
    %597 = arith.index_cast %c7_i32_250 : i32 to index
    %c0_284 = arith.constant 0 : index
    %c0_285 = arith.constant 0 : index
    %598 = vector.load %arg7[%597, %c0_284, %c0_285] : memref<8x8x128xf32, #tpu.memory_space<vmem>>, vector<1x8x128xf32>
    %599 = vector.shape_cast %598 : vector<1x8x128xf32> to vector<8x128xf32>
    %600 = vector.shape_cast %596 : vector<8x128xf32> to vector<1x8x128xf32>
    tpu.vector_store %arg7[%597, %c0_284, %c0_285], %600 {strides = array<i32>} : memref<8x8x128xf32, #tpu.memory_space<vmem>>, vector<1x8x128xf32>,
    %c8_i32_286 = arith.constant 8 : i32
    %c0_287 = arith.constant 0 : index
    %c0_288 = arith.constant 0 : index
    %601 = vector.load %arg9[%c0_287, %c0_288] : memref<8x128xf32, #tpu.memory_space<vmem>>, vector<8x128xf32>
    tpu.vector_store %arg9[%c0_287, %c0_288], %596 {strides = array<i32>} : memref<8x128xf32, #tpu.memory_space<vmem>>, vector<8x128xf32>,
    %c0_i32_289 = arith.constant 0 : i32
    %602 = arith.cmpi eq, %arg1, %c0_i32_289 : i32
    %603 = arith.extui %602 : i1 to i32
    %c0_i32_290 = arith.constant 0 : i32
    %604 = arith.cmpi ne, %603, %c0_i32_290 : i32
    scf.if %604 {
      %c0_291 = arith.constant 0 : index
      %c0_292 = arith.constant 0 : index
      %605 = vector.load %arg8[%c0_291, %c0_292] : memref<8x128xf32, #tpu.memory_space<vmem>>, vector<8x128xf32>
      tpu.vector_store %arg8[%c0_291, %c0_292], %596 {strides = array<i32>} : memref<8x128xf32, #tpu.memory_space<vmem>>, vector<8x128xf32>,
    } else {
    }
    return
  }
  func.func @transform_0(%arg0: i32, %arg1: i32, %arg2: memref<64xi32, #tpu.memory_space<smem>>) -> (i32, i32) {
    %c0_i32 = arith.constant 0 : i32
    %c0_i32_0 = arith.constant 0 : i32
    return %arg0, %c0_i32 : i32, i32
  }
  func.func @transform_1(%arg0: i32, %arg1: i32, %arg2: memref<64xi32, #tpu.memory_space<smem>>) -> (i32, i32) {
    %c0_i32 = arith.constant 0 : i32
    %c0_i32_0 = arith.constant 0 : i32
    %c0_i32_1 = arith.constant 0 : i32
    return %c0_i32, %c0_i32_0 : i32, i32
  }
  func.func @transform_2(%arg0: i32, %arg1: i32, %arg2: memref<64xi32, #tpu.memory_space<smem>>) -> (i32, i32) {
    %c0_i32 = arith.constant 0 : i32
    %c0_i32_0 = arith.constant 0 : i32
    %c0_i32_1 = arith.constant 0 : i32
    return %c0_i32, %c0_i32_0 : i32, i32
  }
  func.func @transform_3(%arg0: i32, %arg1: i32, %arg2: memref<64xi32, #tpu.memory_space<smem>>) -> (i32, i32) {
    %c0_i32 = arith.constant 0 : i32
    %c0_i32_0 = arith.constant 0 : i32
    %c0_i32_1 = arith.constant 0 : i32
    return %c0_i32, %c0_i32_0 : i32, i32
  }
  func.func @transform_4(%arg0: i32, %arg1: i32, %arg2: memref<64xi32, #tpu.memory_space<smem>>) -> (i32, i32, i32) {
    %c0_i32 = arith.constant 0 : i32
    %c0_i32_0 = arith.constant 0 : i32
    return %arg1, %arg0, %c0_i32 : i32, i32, i32
  }
  func.func @transform_5(%arg0: i32, %arg1: i32, %arg2: memref<64xi32, #tpu.memory_space<smem>>) -> (i32, i32) {
    %c0_i32 = arith.constant 0 : i32
    %c0_i32_0 = arith.constant 0 : i32
    return %arg0, %c0_i32 : i32, i32
  }
}

</mosaic_0001>

<bundles_post_ra>
// kernel: tpu_custom_call.1
= control target key start
LH: loop header
LB: loop body
LE: loop exit
PB: predicated region body
PF: predicated region fallthrough
CT: control target
= control target key end

     0   :  { %s2484_s0 = inlined_call_operand.hbm [shape: s32[64], index: 0, kind: input, shape index: {}]   ;;  %s2485_s1 = inlined_call_operand.hbm [shape: f32[8,128], index: 1, kind: input, shape index: {}]   ;;  %s2486_s2 = inlined_call_operand.hbm [shape: f32[128,128], index: 2, kind: input, shape index: {}]   ;;  %s2487_s3 = inlined_call_operand.hbm [shape: f32[128,128], index: 3, kind: input, shape index: {}]   ;;  %s2488_s4 = inlined_call_operand.vmem [shape: f32[1,128], index: 4, kind: input, shape index: {}]   ;;  %s2489_s5 = inlined_call_operand.hbm [shape: f32[8,8,128], index: 5, kind: output, shape index: {0}]   ;;  %s2490_s6 = inlined_call_operand.hbm [shape: f32[8,128], index: 6, kind: output, shape index: {1}]  }
   0x1   :  { %s1998_s23 = scalar_lea.hbm %s2484_s0, 16 }
   0x2   :  { %p1999_p0 = scmp.ne.s32.totalorder %s2484_s0, %s1998_s23  ;;  %p2002_p1 = scmp.lt.u32.totalorder %s1998_s23, %s2484_s0 }
   0x4   :  { %p2004_p2 = pnand %p2002_p1, %p1999_p0 }
   0x6   :  { %2007 = shalt.err (!%p2004_p2)  }
   0x7   :  { %s2128_s28 = smov [#allocation4]  }
   0x8   :  { %13 = dma.hbm_to_smem %s2484_s0, 16, %s2128_s28, [#allocation3] }
   0x9   :  { %2118 = dma.done.wait [#allocation3], 16 }
   0xa   :  { %2119 = vsyncadd [#allocation3], 4294967280 }
   0xb   :  { %15 = sfence }
   0xc   :  { %16 = vsyncpa [#allocation6], 0 }
   0xd   :  { %17 = vsyncpa [#allocation9], 0 }
   0xe   :  { %18 = vsyncpa [#allocation7], 0 }
   0xf   :  { %19 = vsyncpa [#allocation13], 0  ;;  %s2129_s7 = smov [#allocation8]   ;;  %s2008_s11 = scalar_lea.hbm %s2486_s2, 2048 }
  0x10   :  { %s35_s8 = sshll.u32 %s2129_s7, 4  ;;  %p2009_p3 = scmp.ne.s32.totalorder %s2486_s2, %s2008_s11  ;;  %s36_s8 = int_to_ptr.vmem [resolvable:$true] %s35_s8 }
  0x11   :  { %p2012_p4 = scmp.lt.u32.totalorder %s2008_s11, %s2486_s2 }
  0x13   :  { %p2014_p5 = pnand %p2012_p4, %p2009_p3 }
  0x15   :  { %2017 = shalt.err (!%p2014_p5)
}
  0x16   :  { %s2018_s15 = scalar_lea.vmem %s36_s8, 2048  ;;  %p2023_p7 = scmp.lt.s32.totalorder %s36_s8, %s36_s8 }
  0x17   :  { %p2019_p6 = scmp.ne.s32.totalorder %s36_s8, %s2018_s15  ;;  %p2024_p8 = scmp.lt.s32.totalorder %s2018_s15, %s2018_s15 }
  0x19   :  { %p2025_p9 = por %p2024_p8, %p2023_p7 }
  0x1b   :  { %p2026_p10 = pnand %p2025_p9, %p2019_p6 }
  0x1d   :  { %2029 = shalt.err (!%p2026_p10)
}
  0x1e   :  { %s2130_s16 = smov 128   ;;  %s2131_s17 = smov 8  }
  0x1f   :  { %41 = dma.hbm_to_vmem [thread:$0]  %s2486_s2, 2048, %s36_s8, [#allocation9], %s2130_s16, %s2130_s16, %s2131_s17  }
  0x20   :  { %s2132_s20 = smov [#allocation5]   ;;  %s2133_s22 = smov [#allocation10]  }
  0x21   :  { %s26_s21 = sshll.u32 %s2132_s20, 4  ;;  %s47_s23 = sshll.u32 %s2133_s22, 4  ;;  %s27_s21 = int_to_ptr.vmem [resolvable:$true] %s26_s21  ;;  %s48_s23 = int_to_ptr.vmem [resolvable:$true] %s47_s23 }
  0x22   :  { %s2030_s26 = scalar_lea.hbm %s2485_s1, 128 }
  0x23   :  { %p2031_p11 = scmp.ne.s32.totalorder %s2485_s1, %s2030_s26  ;;  %p2034_p12 = scmp.lt.u32.totalorder %s2030_s26, %s2485_s1 }
  0x25   :  { %p2036_p13 = pnand %p2034_p12, %p2031_p11 }
  0x27   :  { %2039 = shalt.err (!%p2036_p13)
}
  0x28   :  { %s2040_s2 = scalar_lea.vmem %s27_s21, 128  ;;  %p2045_p1 = scmp.lt.s32.totalorder %s27_s21, %s27_s21 }
  0x29   :  { %p2041_p0 = scmp.ne.s32.totalorder %s27_s21, %s2040_s2  ;;  %p2046_p2 = scmp.lt.s32.totalorder %s2040_s2, %s2040_s2 }
  0x2b   :  { %p2047_p3 = por %p2046_p2, %p2045_p1 }
  0x2d   :  { %p2048_p4 = pnand %p2047_p3, %p2041_p0 }
  0x2f   :  { %2051 = shalt.err (!%p2048_p4)
}
  0x30   :  { %29 = dma.hbm_to_vmem [thread:$0]  %s2485_s1, 128, %s27_s21, [#allocation6]  }
  0x31   :  { %s2052_s11 = scalar_lea.hbm %s2487_s3, 2048 }
  0x32   :  { %p2053_p5 = scmp.ne.s32.totalorder %s2487_s3, %s2052_s11  ;;  %p2056_p6 = scmp.lt.u32.totalorder %s2052_s11, %s2487_s3 }
  0x34   :  { %p2058_p7 = pnand %p2056_p6, %p2053_p5 }
  0x36   :  { %2061 = shalt.err (!%p2058_p7)
}
  0x37   :  { %s2062_s15 = scalar_lea.vmem %s48_s23, 2048  ;;  %p2067_p9 = scmp.lt.s32.totalorder %s48_s23, %s48_s23 }
  0x38   :  { %p2063_p8 = scmp.ne.s32.totalorder %s48_s23, %s2062_s15  ;;  %p2068_p10 = scmp.lt.s32.totalorder %s2062_s15, %s2062_s15 }
  0x3a   :  { %p2069_p11 = por %p2068_p10, %p2067_p9 }
  0x3c   :  { %p2070_p12 = pnand %p2069_p11, %p2063_p8 }
  0x3e   :  { %2073 = shalt.err (!%p2070_p12)
}
  0x3f   :  { %53 = dma.hbm_to_vmem [thread:$0]  %s2487_s3, 2048, %s48_s23, [#allocation9], %s2130_s16, %s2130_s16, %s2131_s17  }
  0x40   :  { %2120 = dma.done.wait [#allocation6], 128  }
  0x41   :  { %2121 = vsyncadd [#allocation6], 4294967168 }
  0x42   :  { %2122 = dma.done.wait [#allocation9], 4096  }
  0x43   :  { %2123 = vsyncadd [#allocation9], 4294963200  ;;  %v2134_v0 = vmov 0.0|0.0   ;;  %vm2135_vm0 = vmmov 0   ;;  %v2136_v1 = vmov 0.0   ;;  %v71_v2 = vld [vmem:[#allocation10] sm:$0xff] }
  0x44   :  { %1779 = vmatprep.subr.bf16.mxu0 %v2134_v0  ;;  %1531 = vmatprep.mubr.msk.f32.mxu0 %vm2135_vm0, %v2136_v1  ;;  %v72_v3 = vld [vmem:[#allocation10 + $0x8] sm:$0xff]  ;;  %v73_v4 = vld [vmem:[#allocation10 + $0x10] sm:$0xff]  ;;  %v74_v6 = vld [vmem:[#allocation10 + $0x18] sm:$0xff]  ;;  %s1300_s3 = sld [smem:[#allocation4 + $0x1]]  ;;  %s1301_s19 = sld [smem:[#allocation4 + $0x2]]  ;;  %vm151_vm1 = vcmask 1040384  }
  0x45   :  { %1803 = vmatprep.subr.bf16.mxu1 %v2134_v0  ;;  %1566 = vmatprep.mubr.msk.f32.mxu1 %vm2135_vm0, %v2136_v1  ;;  %v2234_v5 = vpack.c.bf16 %v72_v3, %v71_v2  ;;  %v2237_v7 = vpack.c.bf16 %v74_v6, %v73_v4  ;;  %v75_v8 = vld [vmem:[#allocation10 + $0x20] sm:$0xff]  ;;  %v76_v9 = vld [vmem:[#allocation10 + $0x28] sm:$0xff]  ;;  %v77_v11 = vld [vmem:[#allocation10 + $0x30] sm:$0xff]  ;;  %s99_s20 = sld [smem:[#allocation4]]  ;;  %s1302_s21 = sld [smem:[#allocation4 + $0x3]]  ;;  %vm153_vm2 = vcmask 1041408  }
  0x46   :  { %v2243_v10 = vpack.c.bf16 %v76_v9, %v75_v8  ;;  %v78_v12 = vld [vmem:[#allocation10 + $0x38] sm:$0xff]  ;;  %v79_v14 = vld [vmem:[#allocation10 + $0x40] sm:$0xff]  ;;  %v80_v15 = vld [vmem:[#allocation10 + $0x48] sm:$0xff]  ;;  %s1303_s22 = sld [smem:[#allocation4 + $0x4]]  ;;  %s1304_s24 = sld [smem:[#allocation4 + $0x5]]  ;;  %vm155_vm3 = vcmask 1042432  }
  0x47   :  { %1781 = vmatpush3.bf16.msra.mxu0 %v2234_v5  ;;  %1805 = vmatpush3.bf16.msra.mxu1 %v2234_v5  ;;  %v2249_v13 = vpack.c.bf16 %v78_v12, %v77_v11  ;;  %v2255_v16 = vpack.c.bf16 %v80_v15, %v79_v14  ;;  %v81_v17 = vld [vmem:[#allocation10 + $0x50] sm:$0xff]  ;;  %v82_v18 = vld [vmem:[#allocation10 + $0x58] sm:$0xff]  ;;  %v83_v20 = vld [vmem:[#allocation10 + $0x60] sm:$0xff]  ;;  %s1305_s27 = sld [smem:[#allocation4 + $0x6]]  ;;  %s1306_s29 = sld [smem:[#allocation4 + $0x7]]  ;;  %vm157_vm4 = vcmask 1043456  }
  0x48   :  { %1782 = vmatprep.subr.bf16.mxu0 %v2134_v0  ;;  %1806 = vmatprep.subr.bf16.mxu1 %v2134_v0  ;;  %v2261_v19 = vpack.c.bf16 %v82_v18, %v81_v17  ;;  %v84_v21 = vld [vmem:[#allocation10 + $0x68] sm:$0xff]  ;;  %v85_v23 = vld [vmem:[#allocation10 + $0x70] sm:$0xff]  ;;  %v86_v24 = vld [vmem:[#allocation10 + $0x78] sm:$0xff]  ;;  %vm159_vm5 = vcmask 1044480   ;;  %vm161_vm6 = vcmask 1045504   ;;  %vm163_vm7 = vcmask 1046528  }
  0x49   :  { %v2267_v22 = vpack.c.bf16 %v84_v21, %v83_v20  ;;  %v2273_v25 = vpack.c.bf16 %v86_v24, %v85_v23  ;;  %v69_v26 = vld [vmem:[#allocation5] sm:$0xff]  ;;  %s1309_s11 = sld [smem:[#allocation4 + $0xa]]  ;;  %s1307_s12 = sld [smem:[#allocation4 + $0x8]] }
  0x4a   :  { %s104_s23 = scalar_lea.vmem [#allocation8], %s1300_s3  ;;  %s108_s25 = scalar_lea.vmem [#allocation8], %s1301_s19  ;;  %v2310_v49 = vld [vmem:[%s2488_s4] ss:$0 sm:$0xff] }
  0x4b   :  { %1784 = vmatpush3.bf16.msra.mxu0 %v2237_v7  ;;  %1808 = vmatpush3.bf16.msra.mxu1 %v2237_v7  ;;  %v105_v27 = vld [vmem:[%s104_s23] sm:$0x1]  ;;  %s100_s26 = scalar_lea.vmem [#allocation8], %s99_s20  ;;  %s112_s28 = scalar_lea.vmem [#allocation8], %s1302_s21 }
  0x4c   :  { %1785 = vmatprep.subr.bf16.mxu0 %v2134_v0  ;;  %1809 = vmatprep.subr.bf16.mxu1 %v2134_v0  ;;  %v109_v28 = vld [vmem:[%s108_s25] sm:$0x1]  ;;  %v131_v29 = vrot.slane %v105_v27, 7  ;;  %s116_s30 = scalar_lea.vmem [#allocation8], %s1303_s22  ;;  %s120_s2 = scalar_lea.vmem [#allocation8], %s1304_s24 }
  0x4d   :  { %v101_v30 = vld [vmem:[%s100_s26] sm:$0x1]  ;;  %v134_v32 = vrot.slane %v109_v28, 6  ;;  %s124_s7 = scalar_lea.vmem [#allocation8], %s1305_s27  ;;  %s128_s8 = scalar_lea.vmem [#allocation8], %s1306_s29 }
  0x4e   :  { %v113_v31 = vld [vmem:[%s112_s28] sm:$0x1]  ;;  %v152_v33 = vsel %vm151_vm1, %v101_v30, %v131_v29  ;;  %s1308_s4 = sld [smem:[#allocation4 + $0x9]]  ;;  %s1310_s13 = sld [smem:[#allocation4 + $0xb]] }
  0x4f   :  { %1787 = vmatpush3.bf16.msra.mxu0 %v2243_v10  ;;  %1811 = vmatpush3.bf16.msra.mxu1 %v2243_v10  ;;  %v117_v34 = vld [vmem:[%s116_s30] sm:$0x1]  ;;  %v137_v35 = vrot.slane %v113_v31, 5  ;;  %v154_v36 = vsel %vm153_vm2, %v152_v33, %v134_v32  ;;  %s1311_s14 = sld [smem:[#allocation4 + $0xc]]  ;;  %s1312_s15 = sld [smem:[#allocation4 + $0xd]] }
  0x50   :  { %1788 = vmatprep.subr.bf16.mxu0 %v2134_v0  ;;  %1812 = vmatprep.subr.bf16.mxu1 %v2134_v0  ;;  %v121_v37 = vld [vmem:[%s120_s2] sm:$0x1]  ;;  %v140_v38 = vrot.slane %v117_v34, 4  ;;  %s251_s1 = scalar_lea.vmem [#allocation8], %s1309_s11  ;;  %s243_s18 = scalar_lea.vmem [#allocation8], %s1307_s12 }
  0x51   :  { %v156_v39 = vsel %vm155_vm3, %v154_v36, %v137_v35  ;;  %v125_v40 = vld [vmem:[%s124_s7] sm:$0x1]  ;;  %v143_v41 = vrot.slane %v121_v37, 3  ;;  %s1313_s3 = sld [smem:[#allocation4 + $0xe]]  ;;  %s1314_s20 = sld [smem:[#allocation4 + $0xf]] }
  0x52   :  { %v158_v42 = vsel %vm157_vm4, %v156_v39, %v140_v38  ;;  %v129_v43 = vld [vmem:[%s128_s8] sm:$0x1]  ;;  %v146_v44 = vrot.slane %v125_v40, 2  ;;  %s1316_s25 = sld [smem:[#allocation4 + $0x11]]  ;;  %s1317_s26 = sld [smem:[#allocation4 + $0x12]] }
  0x53   :  { %1790 = vmatpush3.bf16.msra.mxu0 %v2249_v13  ;;  %1814 = vmatpush3.bf16.msra.mxu1 %v2249_v13  ;;  %v160_v45 = vsel %vm159_vm5, %v158_v42, %v143_v41  ;;  %v149_v46 = vrot.slane %v129_v43, 1  ;;  %v252_v56 = vld [vmem:[%s251_s1] sm:$0x1]  ;;  %s1315_s27 = sld [smem:[#allocation4 + $0x10]]  ;;  %s1318_s28 = sld [smem:[#allocation4 + $0x13]] }
  0x54   :  { %1791 = vmatprep.subr.bf16.mxu0 %v2134_v0  ;;  %1815 = vmatprep.subr.bf16.mxu1 %v2134_v0  ;;  %v162_v47 = vsel %vm161_vm6, %v160_v45, %v146_v44  ;;  %s247_s0 = scalar_lea.vmem [#allocation8], %s1308_s4  ;;  %v244_v58 = vld [vmem:[%s243_s18] sm:$0x1]  ;;  %s255_s19 = scalar_lea.vmem [#allocation8], %s1310_s13  ;;  %v277_v60 = vrot.slane %v252_v56, 6 }
  0x55   :  { %v164_v48 = vsel %vm163_vm7, %v162_v47, %v149_v46  ;;  %v248_v55 = vld [vmem:[%s247_s0] sm:$0x1]  ;;  %s259_s21 = scalar_lea.vmem [#allocation8], %s1311_s14  ;;  %s263_s22 = scalar_lea.vmem [#allocation8], %s1312_s15 }
  0x56   :  { %v274_v57 = vrot.slane %v248_v55, 7  ;;  %v256_v59 = vld [vmem:[%s255_s19] sm:$0x1]  ;;  %s1319_s29 = sld [smem:[#allocation4 + $0x14]]  ;;  %s1320_s2 = sld [smem:[#allocation4 + $0x15]] }
  0x57   :  { %1793 = vmatpush3.bf16.msra.mxu0 %v2255_v16  ;;  %1817 = vmatpush3.bf16.msra.mxu1 %v2255_v16  ;;  %v260_v62 = vld [vmem:[%s259_s21] sm:$0x1]  ;;  %v280_v63 = vrot.slane %v256_v59, 5  ;;  %s267_s23 = scalar_lea.vmem [#allocation8], %s1313_s3  ;;  %s271_s24 = scalar_lea.vmem [#allocation8], %s1314_s20 }
  0x58   :  { %1794 = vmatprep.subr.bf16.mxu0 %v2134_v0  ;;  %1818 = vmatprep.subr.bf16.mxu1 %v2134_v0  ;;  %v294_v61 = vsel %vm151_vm1, %v244_v58, %v274_v57  ;;  %v264_v3 = vld [vmem:[%s263_s22] sm:$0x1]  ;;  %v283_v4 = vrot.slane %v260_v62, 4  ;;  %s384_s30 = scalar_lea.vmem [#allocation8], %s1316_s25  ;;  %s388_s7 = scalar_lea.vmem [#allocation8], %s1317_s26 }
  0x59   :  { %v295_v2 = vsel %vm153_vm2, %v294_v61, %v277_v60  ;;  %v268_v8 = vld [vmem:[%s267_s23] sm:$0x1]  ;;  %v286_v9 = vrot.slane %v264_v3, 3  ;;  %s380_s8 = scalar_lea.vmem [#allocation8], %s1315_s27  ;;  %s1321_s9 = sld [smem:[#allocation4 + $0x16]] }
  0x5a   :  { %v296_v6 = vsel %vm155_vm3, %v295_v2, %v280_v63  ;;  %v272_v12 = vld [vmem:[%s271_s24] sm:$0x1]  ;;  %v289_v14 = vrot.slane %v268_v8, 2  ;;  %s392_s10 = scalar_lea.vmem [#allocation8], %s1318_s28  ;;  %s1322_s4 = sld [smem:[#allocation4 + $0x17]] }
  0x5b   :  { %1796 = vmatpush3.bf16.msra.mxu0 %v2261_v19  ;;  %1820 = vmatpush3.bf16.msra.mxu1 %v2261_v19  ;;  %v297_v11 = vsel %vm157_vm4, %v296_v6, %v283_v4  ;;  %v292_v17 = vrot.slane %v272_v12, 1  ;;  %v385_v28 = vld [vmem:[%s384_s30] sm:$0x1]  ;;  %s1324_s0 = sld [smem:[#allocation4 + $0x19]]  ;;  %s1325_s15 = sld [smem:[#allocation4 + $0x1a]] }
  0x5c   :  { %1797 = vmatprep.subr.bf16.mxu0 %v2134_v0  ;;  %1821 = vmatprep.subr.bf16.mxu1 %v2134_v0  ;;  %v298_v15 = vsel %vm159_vm5, %v297_v11, %v286_v9  ;;  %v389_v29 = vld [vmem:[%s388_s7] sm:$0x1]  ;;  %v411_v30 = vrot.slane %v385_v28, 7  ;;  %s396_s11 = scalar_lea.vmem [#allocation8], %s1319_s29  ;;  %s400_s12 = scalar_lea.vmem [#allocation8], %s1320_s2 }
  0x5d   :  { %v299_v18 = vsel %vm161_vm6, %v298_v15, %v289_v14  ;;  %v381_v31 = vld [vmem:[%s380_s8] sm:$0x1]  ;;  %v414_v33 = vrot.slane %v389_v29, 6  ;;  %s1323_s1 = sld [smem:[#allocation4 + $0x18]]  ;;  %s1326_s18 = sld [smem:[#allocation4 + $0x1b]] }
  0x5e   :  { %v300_v20 = vsel %vm163_vm7, %v299_v18, %v292_v17  ;;  %v393_v32 = vld [vmem:[%s392_s10] sm:$0x1]  ;;  %v431_v34 = vsel %vm151_vm1, %v381_v31, %v411_v30  ;;  %s1327_s3 = sld [smem:[#allocation4 + $0x1c]]  ;;  %s1328_s20 = sld [smem:[#allocation4 + $0x1d]] }
  0x5f   :  { %1799 = vmatpush3.bf16.msra.mxu0 %v2267_v22  ;;  %1823 = vmatpush3.bf16.msra.mxu1 %v2267_v22  ;;  %v397_v35 = vld [vmem:[%s396_s11] sm:$0x1]  ;;  %v417_v36 = vrot.slane %v393_v32, 5  ;;  %v432_v37 = vsel %vm153_vm2, %v431_v34, %v414_v33  ;;  %s404_s13 = scalar_lea.vmem [#allocation8], %s1321_s9  ;;  %s1329_s23 = sld [smem:[#allocation4 + $0x1e]] }
  0x60   :  { %1800 = vmatprep.subr.bf16.mxu0 %v2134_v0  ;;  %1824 = vmatprep.subr.bf16.mxu1 %v2134_v0  ;;  %v401_v38 = vld [vmem:[%s400_s12] sm:$0x1]  ;;  %v420_v39 = vrot.slane %v397_v35, 4  ;;  %s408_s14 = scalar_lea.vmem [#allocation8], %s1322_s4  ;;  %s1330_s25 = sld [smem:[#allocation4 + $0x1f]] }
  0x61   :  { %v433_v40 = vsel %vm155_vm3, %v432_v37, %v417_v36  ;;  %v405_v41 = vld [vmem:[%s404_s13] sm:$0x1]  ;;  %v423_v42 = vrot.slane %v401_v38, 3  ;;  %s521_s19 = scalar_lea.vmem [#allocation8], %s1324_s0  ;;  %s525_s21 = scalar_lea.vmem [#allocation8], %s1325_s15 }
  0x62   :  { %v434_v43 = vsel %vm157_vm4, %v433_v40, %v420_v39  ;;  %v409_v44 = vld [vmem:[%s408_s14] sm:$0x1]  ;;  %v426_v45 = vrot.slane %v405_v41, 2  ;;  %s1332_s30 = sld [smem:[#allocation4 + $0x21]]  ;;  %s1333_s2 = sld [smem:[#allocation4 + $0x22]] }
  0x63   :  { %1802 = vmatpush3.bf16.msra.mxu0 %v2273_v25  ;;  %1826 = vmatpush3.bf16.msra.mxu1 %v2273_v25  ;;  %v435_v46 = vsel %vm159_vm5, %v434_v43, %v423_v42  ;;  %v429_v47 = vrot.slane %v409_v44, 1  ;;  %v522_v56 = vld [vmem:[%s521_s19] sm:$0x1]  ;;  %s517_s22 = scalar_lea.vmem [#allocation8], %s1323_s1  ;;  %s529_s24 = scalar_lea.vmem [#allocation8], %s1326_s18 }
  0x64   :  { %1827 = vmatprep.subr.bf16.mxu0 %v2134_v0  ;;  %1851 = vmatprep.subr.bf16.mxu1 %v2134_v0  ;;  %v526_v57 = vld [vmem:[%s525_s21] sm:$0x1]  ;;  %v548_v58 = vrot.slane %v522_v56, 7  ;;  %s533_s26 = scalar_lea.vmem [#allocation8], %s1327_s3  ;;  %s537_s27 = scalar_lea.vmem [#allocation8], %s1328_s20 }
  0x65   :  { %v518_v59 = vld [vmem:[%s517_s22] sm:$0x1]  ;;  %v551_v61 = vrot.slane %v526_v57, 6  ;;  %s541_s28 = scalar_lea.vmem [#allocation8], %s1329_s23  ;;  %s1331_s7 = sld [smem:[#allocation4 + $0x20]] }
  0x66   :  { %1532 = vmatmul.mubr.f32.vlgmr.msra.gmra.mrb[0].mxu0 %v69_v26  ;;  %v530_v60 = vld [vmem:[%s529_s24] sm:$0x1]  ;;  %v568_v62 = vsel %vm151_vm1, %v518_v59, %v548_v58  ;;  %s545_s29 = scalar_lea.vmem [#allocation8], %s1330_s25  ;;  %s1334_s8 = sld [smem:[#allocation4 + $0x23]] }
  0x67   :  { %1829 = vmatpush3.bf16.msra.mxu0 %v2234_v5  ;;  %1601 = vmatprep.mubr.msk.f32.mxu0 %vm2135_vm0, %v2136_v1  ;;  %v534_v63 = vld [vmem:[%s533_s26] sm:$0x1]  ;;  %v554_v2 = vrot.slane %v530_v60, 5  ;;  %v569_v3 = vsel %vm153_vm2, %v568_v62, %v551_v61  ;;  %s1335_s9 = sld [smem:[#allocation4 + $0x24]]  ;;  %s1336_s4 = sld [smem:[#allocation4 + $0x25]] }
  0x68   :  { %1830 = vmatprep.subr.bf16.mxu0 %v2134_v0  ;;  %v538_v4 = vld [vmem:[%s537_s27] sm:$0x1]  ;;  %v557_v6 = vrot.slane %v534_v63, 4  ;;  %s658_s10 = scalar_lea.vmem [#allocation8], %s1332_s30  ;;  %s662_s11 = scalar_lea.vmem [#allocation8], %s1333_s2 }
  0x69   :  { %v570_v8 = vsel %vm155_vm3, %v569_v3, %v554_v2  ;;  %v542_v9 = vld [vmem:[%s541_s28] sm:$0x1]  ;;  %v560_v11 = vrot.slane %v538_v4, 3  ;;  %s1337_s13 = sld [smem:[#allocation4 + $0x26]]  ;;  %s1338_s0 = sld [smem:[#allocation4 + $0x27]] }
  0x6a   :  { %v571_v12 = vsel %vm157_vm4, %v570_v8, %v557_v6  ;;  %v546_v14 = vld [vmem:[%s545_s29] sm:$0x1]  ;;  %v563_v15 = vrot.slane %v542_v9, 2  ;;  %s1340_s19 = sld [smem:[#allocation4 + $0x29]]  ;;  %s1341_s20 = sld [smem:[#allocation4 + $0x2a]] }
  0x6b   :  { %1832 = vmatpush3.bf16.msra.mxu0 %v2237_v7  ;;  %v572_v17 = vsel %vm159_vm5, %v571_v12, %v560_v11  ;;  %v566_v18 = vrot.slane %v546_v14, 1  ;;  %v659_v29 = vld [vmem:[%s658_s10] sm:$0x1]  ;;  %s654_s12 = scalar_lea.vmem [#allocation8], %s1331_s7  ;;  %s1339_s21 = sld [smem:[#allocation4 + $0x28]] }
  0x6c   :  { %1833 = vmatprep.subr.bf16.mxu0 %v2134_v0  ;;  %v663_v30 = vld [vmem:[%s662_s11] sm:$0x1]  ;;  %v685_v31 = vrot.slane %v659_v29, 7  ;;  %s666_s14 = scalar_lea.vmem [#allocation8], %s1334_s8  ;;  %s1342_s22 = sld [smem:[#allocation4 + $0x2b]] }
  0x6d   :  { %v655_v32 = vld [vmem:[%s654_s12] sm:$0x1]  ;;  %v688_v34 = vrot.slane %v663_v30, 6  ;;  %s670_s15 = scalar_lea.vmem [#allocation8], %s1335_s9  ;;  %s674_s1 = scalar_lea.vmem [#allocation8], %s1336_s4 }
  0x6e   :  { %v667_v33 = vld [vmem:[%s666_s14] sm:$0x1]  ;;  %v705_v35 = vsel %vm151_vm1, %v655_v32, %v685_v31  ;;  %s1343_s23 = sld [smem:[#allocation4 + $0x2c]]  ;;  %s1344_s25 = sld [smem:[#allocation4 + $0x2d]] }
  0x6f   :  { %1835 = vmatpush3.bf16.msra.mxu0 %v2243_v10  ;;  %v671_v36 = vld [vmem:[%s670_s15] sm:$0x1]  ;;  %v691_v37 = vrot.slane %v667_v33, 5  ;;  %v706_v38 = vsel %vm153_vm2, %v705_v35, %v688_v34  ;;  %s678_s18 = scalar_lea.vmem [#allocation8], %s1337_s13  ;;  %s682_s3 = scalar_lea.vmem [#allocation8], %s1338_s0 }
  0x70   :  { %1836 = vmatprep.subr.bf16.mxu0 %v2134_v0  ;;  %v675_v39 = vld [vmem:[%s674_s1] sm:$0x1]  ;;  %v694_v40 = vrot.slane %v671_v36, 4  ;;  %s795_s24 = scalar_lea.vmem [#allocation8], %s1340_s19  ;;  %s799_s26 = scalar_lea.vmem [#allocation8], %s1341_s20 }
  0x71   :  { %v707_v41 = vsel %vm155_vm3, %v706_v38, %v691_v37  ;;  %v679_v42 = vld [vmem:[%s678_s18] sm:$0x1]  ;;  %v697_v43 = vrot.slane %v675_v39, 3  ;;  %s791_s27 = scalar_lea.vmem [#allocation8], %s1339_s21  ;;  %s1345_s28 = sld [smem:[#allocation4 + $0x2e]] }
  0x72   :  { %v708_v44 = vsel %vm157_vm4, %v707_v41, %v694_v40  ;;  %s803_s29 = scalar_lea.vmem [#allocation8], %s1342_s22  ;;  %s1346_s30 = sld [smem:[#allocation4 + $0x2f]] }
  0x73   :  { %1838 = vmatpush3.bf16.msra.mxu0 %v2249_v13  ;;  %s1348_s10 = sld [smem:[#allocation4 + $0x31]]  ;;  %s1349_s4 = sld [smem:[#allocation4 + $0x32]] }
  0x74   :  { %1839 = vmatprep.subr.bf16.mxu0 %v2134_v0  ;;  %s807_s2 = scalar_lea.vmem [#allocation8], %s1343_s23  ;;  %s811_s7 = scalar_lea.vmem [#allocation8], %s1344_s25 }
  0x75   :  { %v812_v57 = vld [vmem:[%s811_s7] sm:$0x1]  ;;  %s1347_s11 = sld [smem:[#allocation4 + $0x30]]  ;;  %s1350_s12 = sld [smem:[#allocation4 + $0x33]] }
  0x76   :  { %v834_v61 = vrot.slane %v812_v57, 3  ;;  %s1351_s13 = sld [smem:[#allocation4 + $0x34]]  ;;  %s1352_s0 = sld [smem:[#allocation4 + $0x35]] }
  0x77   :  { %1841 = vmatpush3.bf16.msra.mxu0 %v2255_v16  ;;  %s815_s8 = scalar_lea.vmem [#allocation8], %s1345_s28  ;;  %s1353_s18 = sld [smem:[#allocation4 + $0x36]] }
  0x78   :  { %1842 = vmatprep.subr.bf16.mxu0 %v2134_v0  ;;  %v816_v60 = vld [vmem:[%s815_s8] sm:$0x1]  ;;  %s819_s9 = scalar_lea.vmem [#allocation8], %s1346_s30  ;;  %s1354_s19 = sld [smem:[#allocation4 + $0x37]] }
  0x79   :  { %v820_v63 = vld [vmem:[%s819_s9] sm:$0x1]  ;;  %v837_v2 = vrot.slane %v816_v60, 2  ;;  %s932_s14 = scalar_lea.vmem [#allocation8], %s1348_s10  ;;  %s936_s15 = scalar_lea.vmem [#allocation8], %s1349_s4 }
  0x7a   :  { %v840_v4 = vrot.slane %v820_v63, 1  ;;  %s1357_s25 = sld [smem:[#allocation4 + $0x3a]]  ;;  %s1359_s28 = sld [smem:[#allocation4 + $0x3c]] }
  0x7b   :  { %1844 = vmatpush3.bf16.msra.mxu0 %v2261_v19  ;;  %s928_s1 = scalar_lea.vmem [#allocation8], %s1347_s11  ;;  %s1360_s30 = sld [smem:[#allocation4 + $0x3d]] }
  0x7c   :  { %1845 = vmatprep.subr.bf16.mxu0 %v2134_v0  ;;  %s944_s20 = scalar_lea.vmem [#allocation8], %s1351_s13  ;;  %s948_s21 = scalar_lea.vmem [#allocation8], %s1352_s0 }
  0x7d   :  { %v949_v30 = vld [vmem:[%s948_s21] sm:$0x1]  ;;  %s952_s22 = scalar_lea.vmem [#allocation8], %s1353_s18  ;;  %s1361_s8 = sld [smem:[#allocation4 + $0x3e]] }
  0x7e   :  { %v953_v33 = vld [vmem:[%s952_s22] sm:$0x1]  ;;  %v971_v34 = vrot.slane %v949_v30, 3  ;;  %s956_s23 = scalar_lea.vmem [#allocation8], %s1354_s19  ;;  %s1362_s10 = sld [smem:[#allocation4 + $0x3f]] }
  0x7f   :  { %1847 = vmatpush3.bf16.msra.mxu0 %v2267_v22  ;;  %v957_v36 = vld [vmem:[%s956_s23] sm:$0x1]  ;;  %v974_v37 = vrot.slane %v953_v33, 2 }
  0x80   :  { %1848 = vmatprep.subr.bf16.mxu0 %v2134_v0  ;;  %v977_v39 = vrot.slane %v957_v36, 1  ;;  %s1081_s4 = scalar_lea.vmem [#allocation8], %s1359_s28 }
  0x81   :  { %s1085_s11 = scalar_lea.vmem [#allocation8], %s1360_s30 }
  0x83   :  { %1850 = vmatpush3.bf16.msra.mxu0 %v2273_v25 }
  0x84   :  { %1875 = vmatprep.subr.bf16.mxu0 %v2134_v0  ;;  %s1093_s13 = scalar_lea.vmem [#allocation8], %s1362_s10 }
 0x139   :  { %v231_v50 = vpop.f32.mrb[0].mxu0 }
 0x13a   :  { %v235_v51 = vadd.f32 %v231_v50, %v164_v48  ;;  %v1533_v52 = vpop.f32.mrb[1].mxu0  ;;  %v436_v48 = vsel %vm161_vm6, %v435_v46, %v426_v45  ;;  %v683_v45 = vld [vmem:[%s682_s3] sm:$0x1]  ;;  %v700_v46 = vrot.slane %v679_v42, 2  ;;  %s940_s3 = scalar_lea.vmem [#allocation8], %s1350_s12  ;;  %s1089_s12 = scalar_lea.vmem [#allocation8], %s1361_s8 }
 0x13b   :  { %v437_v50 = vsel %vm163_vm7, %v436_v48, %v429_v47  ;;  %v709_v47 = vsel %vm159_vm5, %v708_v44, %v697_v43  ;;  %v703_v48 = vrot.slane %v683_v45, 1 }
 0x13c   :  { %v236_v53 = vadd.f32 %v2310_v49, %v235_v51 }
 0x13e   :  { %1982 = vtanh.f32 %v236_v53 }
 0x148   :  { %v1983_v54 = vpop.eup %1982 }
 0x149   :  { %238 = vst [vmem:[#allocation11] sm:$0xff] %v1983_v54  ;;  %1567 = vmatmul.mubr.f32.vlgmr.msra.gmra.mrb[0].mxu1 %v1983_v54 }
 0x14a   :  { %1853 = vmatpush3.bf16.msra.mxu1 %v2234_v5  ;;  %1636 = vmatprep.mubr.msk.f32.mxu1 %vm2135_vm0, %v2136_v1 }
 0x14b   :  { %1854 = vmatprep.subr.bf16.mxu1 %v2134_v0 }
 0x14e   :  { %1856 = vmatpush3.bf16.msra.mxu1 %v2237_v7 }
 0x14f   :  { %1857 = vmatprep.subr.bf16.mxu1 %v2134_v0 }
 0x152   :  { %1859 = vmatpush3.bf16.msra.mxu1 %v2243_v10 }
 0x153   :  { %1860 = vmatprep.subr.bf16.mxu1 %v2134_v0 }
 0x156   :  { %1862 = vmatpush3.bf16.msra.mxu1 %v2249_v13 }
 0x157   :  { %1863 = vmatprep.subr.bf16.mxu1 %v2134_v0 }
 0x15a   :  { %1865 = vmatpush3.bf16.msra.mxu1 %v2255_v16 }
 0x15b   :  { %1866 = vmatprep.subr.bf16.mxu1 %v2134_v0 }
 0x15e   :  { %1868 = vmatpush3.bf16.msra.mxu1 %v2261_v19 }
 0x15f   :  { %1869 = vmatprep.subr.bf16.mxu1 %v2134_v0 }
 0x162   :  { %1871 = vmatpush3.bf16.msra.mxu1 %v2267_v22 }
 0x163   :  { %1872 = vmatprep.subr.bf16.mxu1 %v2134_v0 }
 0x166   :  { %1874 = vmatpush3.bf16.msra.mxu1 %v2273_v25 }
 0x167   :  { %1899 = vmatprep.subr.bf16.mxu1 %v2134_v0 }
 0x21c   :  { %v367_v21 = vpop.f32.mrb[0].mxu1 }
 0x21d   :  { %v371_v23 = vadd.f32 %v367_v21, %v300_v20  ;;  %v1568_v24 = vpop.f32.mrb[1].mxu1  ;;  %v573_v20 = vsel %vm161_vm6, %v572_v17, %v563_v15  ;;  %v933_v17 = vld [vmem:[%s932_s14] sm:$0x1]  ;;  %s2137_s14 = smov [#allocation11]  }
 0x21e   :  { %v574_v21 = vsel %vm163_vm7, %v573_v20, %v566_v18  ;;  %v937_v18 = vld [vmem:[%s936_s15] sm:$0x1]  ;;  %v959_v20 = vrot.slane %v933_v17, 7  ;;  %s1208_s0 = sshll.u32 %s2137_s14, 4  ;;  %s2138_s15 = smov [#allocation12]   ;;  %s1209_s0 = int_to_ptr.vmem [resolvable:$true] %s1208_s0 }
 0x21f   :  { %v372_v26 = vadd.f32 %v2310_v49, %v371_v23  ;;  %s2074_s18 = scalar_lea.vmem %s1209_s0, 1024  ;;  %p2079_p0 = scmp.lt.s32.totalorder %s1209_s0, %s1209_s0 }
 0x220   :  { %p2075_p13 = scmp.ne.s32.totalorder %s1209_s0, %s2074_s18  ;;  %p2080_p1 = scmp.lt.s32.totalorder %s2074_s18, %s2074_s18 }
 0x221   :  { %1984 = vtanh.f32 %v372_v26 }
 0x222   :  { %p2081_p2 = por %p2080_p1, %p2079_p0 }
 0x224   :  { %p2082_p3 = pnand %p2081_p2, %p2075_p13 }
 0x22b   :  { %v1985_v27 = vpop.eup %1984 }
 0x22c   :  { %375 = vst [vmem:[#allocation11 + $0x8] sm:$0xff] %v1985_v27  ;;  %1602 = vmatmul.mubr.f32.vlgmr.msra.gmra.mrb[2].mxu0 %v1985_v27 }
 0x22d   :  { %1877 = vmatpush3.bf16.msra.mxu0 %v2234_v5  ;;  %1671 = vmatprep.mubr.msk.f32.mxu0 %vm2135_vm0, %v2136_v1 }
 0x22e   :  { %1878 = vmatprep.subr.bf16.mxu0 %v2134_v0 }
 0x231   :  { %1880 = vmatpush3.bf16.msra.mxu0 %v2237_v7 }
 0x232   :  { %1881 = vmatprep.subr.bf16.mxu0 %v2134_v0 }
 0x235   :  { %1883 = vmatpush3.bf16.msra.mxu0 %v2243_v10 }
 0x236   :  { %1884 = vmatprep.subr.bf16.mxu0 %v2134_v0 }
 0x239   :  { %1886 = vmatpush3.bf16.msra.mxu0 %v2249_v13 }
 0x23a   :  { %1887 = vmatprep.subr.bf16.mxu0 %v2134_v0 }
 0x23d   :  { %1889 = vmatpush3.bf16.msra.mxu0 %v2255_v16 }
 0x23e   :  { %1890 = vmatprep.subr.bf16.mxu0 %v2134_v0 }
 0x241   :  { %1892 = vmatpush3.bf16.msra.mxu0 %v2261_v19 }
 0x242   :  { %1893 = vmatprep.subr.bf16.mxu0 %v2134_v0 }
 0x245   :  { %1895 = vmatpush3.bf16.msra.mxu0 %v2267_v22 }
 0x246   :  { %1896 = vmatprep.subr.bf16.mxu0 %v2134_v0 }
 0x249   :  { %1898 = vmatpush3.bf16.msra.mxu0 %v2273_v25 }
 0x24a   :  { %1923 = vmatprep.subr.bf16.mxu0 %v2134_v0 }
 0x2ff   :  { %v504_v51 = vpop.f32.mrb[2].mxu0 }
 0x300   :  { %v508_v52 = vadd.f32 %v504_v51, %v437_v50  ;;  %v1603_v53 = vpop.f32.mrb[3].mxu0  ;;  %v710_v50 = vsel %vm161_vm6, %v709_v47, %v700_v46 }
 0x301   :  { %v711_v51 = vsel %vm163_vm7, %v710_v50, %v703_v48 }
 0x302   :  { %v509_v54 = vadd.f32 %v2310_v49, %v508_v52 }
 0x304   :  { %1986 = vtanh.f32 %v509_v54 }
 0x30e   :  { %v1987_v55 = vpop.eup %1986 }
 0x30f   :  { %512 = vst [vmem:[#allocation11 + $0x10] sm:$0xff] %v1987_v55  ;;  %1637 = vmatmul.mubr.f32.vlgmr.msra.gmra.mrb[2].mxu1 %v1987_v55 }
 0x310   :  { %1901 = vmatpush3.bf16.msra.mxu1 %v2234_v5  ;;  %1706 = vmatprep.mubr.msk.f32.mxu1 %vm2135_vm0, %v2136_v1 }
 0x311   :  { %1902 = vmatprep.subr.bf16.mxu1 %v2134_v0 }
 0x314   :  { %1904 = vmatpush3.bf16.msra.mxu1 %v2237_v7 }
 0x315   :  { %1905 = vmatprep.subr.bf16.mxu1 %v2134_v0 }
 0x318   :  { %1907 = vmatpush3.bf16.msra.mxu1 %v2243_v10 }
 0x319   :  { %1908 = vmatprep.subr.bf16.mxu1 %v2134_v0 }
 0x31c   :  { %1910 = vmatpush3.bf16.msra.mxu1 %v2249_v13 }
 0x31d   :  { %1911 = vmatprep.subr.bf16.mxu1 %v2134_v0 }
 0x320   :  { %1913 = vmatpush3.bf16.msra.mxu1 %v2255_v16 }
 0x321   :  { %1914 = vmatprep.subr.bf16.mxu1 %v2134_v0 }
 0x324   :  { %1916 = vmatpush3.bf16.msra.mxu1 %v2261_v19 }
 0x325   :  { %1917 = vmatprep.subr.bf16.mxu1 %v2134_v0 }
 0x328   :  { %1919 = vmatpush3.bf16.msra.mxu1 %v2267_v22 }
 0x329   :  { %1920 = vmatprep.subr.bf16.mxu1 %v2134_v0 }
 0x32c   :  { %1922 = vmatpush3.bf16.msra.mxu1 %v2273_v25 }
 0x32d   :  { %1947 = vmatprep.subr.bf16.mxu1 %v2134_v0 }
 0x3e2   :  { %v641_v23 = vpop.f32.mrb[2].mxu1 }
 0x3e3   :  { %v645_v24 = vadd.f32 %v641_v23, %v574_v21  ;;  %v1638_v26 = vpop.f32.mrb[3].mxu1  ;;  %v929_v21 = vld [vmem:[%s928_s1] sm:$0x1]  ;;  %s1221_s1 = sshll.u32 %s2138_s15, 4  ;;  %s1222_s1 = int_to_ptr.vmem [resolvable:$true] %s1221_s1 }
 0x3e4   :  { %v941_v23 = vld [vmem:[%s940_s3] sm:$0x1]  ;;  %v979_v26 = vsel %vm151_vm1, %v929_v21, %v959_v20 }
 0x3e5   :  { %v646_v27 = vadd.f32 %v2310_v49, %v645_v24  ;;  %v962_v24 = vrot.slane %v937_v18, 6 }
 0x3e7   :  { %1988 = vtanh.f32 %v646_v27  ;;  %v945_v27 = vld [vmem:[%s944_s20] sm:$0x1]  ;;  %v980_v29 = vsel %vm153_vm2, %v979_v26, %v962_v24 }
 0x3e8   :  { %v968_v31 = vrot.slane %v945_v27, 4 }
 0x3f1   :  { %v1989_v28 = vpop.eup %1988 }
 0x3f2   :  { %649 = vst [vmem:[#allocation11 + $0x18] sm:$0xff] %v1989_v28  ;;  %1672 = vmatmul.mubr.f32.vlgmr.msra.gmra.mrb[4].mxu0 %v1989_v28  ;;  %v965_v28 = vrot.slane %v941_v23, 5 }
 0x3f3   :  { %1925 = vmatpush3.bf16.msra.mxu0 %v2234_v5  ;;  %1741 = vmatprep.mubr.msk.f32.mxu0 %vm2135_vm0, %v2136_v1 }
 0x3f4   :  { %1926 = vmatprep.subr.bf16.mxu0 %v2134_v0  ;;  %v981_v32 = vsel %vm155_vm3, %v980_v29, %v965_v28 }
 0x3f5   :  { %v982_v35 = vsel %vm157_vm4, %v981_v32, %v968_v31 }
 0x3f6   :  { %v983_v38 = vsel %vm159_vm5, %v982_v35, %v971_v34 }
 0x3f7   :  { %1928 = vmatpush3.bf16.msra.mxu0 %v2237_v7  ;;  %v984_v40 = vsel %vm161_vm6, %v983_v38, %v974_v37 }
 0x3f8   :  { %1929 = vmatprep.subr.bf16.mxu0 %v2134_v0  ;;  %v985_v41 = vsel %vm163_vm7, %v984_v40, %v977_v39 }
 0x3fb   :  { %1931 = vmatpush3.bf16.msra.mxu0 %v2243_v10 }
 0x3fc   :  { %1932 = vmatprep.subr.bf16.mxu0 %v2134_v0 }
 0x3ff   :  { %1934 = vmatpush3.bf16.msra.mxu0 %v2249_v13 }
 0x400   :  { %1935 = vmatprep.subr.bf16.mxu0 %v2134_v0 }
 0x403   :  { %1937 = vmatpush3.bf16.msra.mxu0 %v2255_v16 }
 0x404   :  { %1938 = vmatprep.subr.bf16.mxu0 %v2134_v0 }
 0x407   :  { %1940 = vmatpush3.bf16.msra.mxu0 %v2261_v19 }
 0x408   :  { %1941 = vmatprep.subr.bf16.mxu0 %v2134_v0 }
 0x40b   :  { %1943 = vmatpush3.bf16.msra.mxu0 %v2267_v22 }
 0x40c   :  { %1944 = vmatprep.subr.bf16.mxu0 %v2134_v0 }
 0x40f   :  { %1946 = vmatpush3.bf16.msra.mxu0 %v2273_v25 }
 0x4c5   :  { %v778_v52 = vpop.f32.mrb[4].mxu0 }
 0x4c6   :  { %v782_v53 = vadd.f32 %v778_v52, %v711_v51  ;;  %v1673_v54 = vpop.f32.mrb[5].mxu0 }
 0x4c8   :  { %v783_v55 = vadd.f32 %v2310_v49, %v782_v53 }
 0x4ca   :  { %1990 = vtanh.f32 %v783_v55  ;;  %v1082_v55 = vld [vmem:[%s1081_s4] sm:$0x1] }
 0x4d4   :  { %v1991_v56 = vpop.eup %1990 }
 0x4d5   :  { %786 = vst [vmem:[#allocation11 + $0x20] sm:$0xff] %v1991_v56  ;;  %1707 = vmatmul.mubr.f32.vlgmr.msra.gmra.mrb[4].mxu1 %v1991_v56 }
 0x4d6   :  { %1949 = vmatpush3.bf16.msra.mxu1 %v2234_v5  ;;  %1776 = vmatprep.mubr.msk.f32.mxu1 %vm2135_vm0, %v2136_v1  ;;  %v796_v1 = vld [vmem:[%s795_s24] sm:$0x1]  ;;  %s1356_s24 = sld [smem:[#allocation4 + $0x39]] }
 0x4d7   :  { %1950 = vmatprep.subr.bf16.mxu1 %v2134_v0  ;;  %v800_v5 = vld [vmem:[%s799_s26] sm:$0x1]  ;;  %s1355_s26 = sld [smem:[#allocation4 + $0x38]] }
 0x4da   :  { %1952 = vmatpush3.bf16.msra.mxu1 %v2237_v7  ;;  %v822_v7 = vrot.slane %v796_v1, 7 }
 0x4db   :  { %1953 = vmatprep.subr.bf16.mxu1 %v2134_v0 }
 0x4dd   :  { %s1065_s7 = scalar_lea.vmem [#allocation8], %s1355_s26 }
 0x4de   :  { %1955 = vmatpush3.bf16.msra.mxu1 %v2243_v10  ;;  %v792_v10 = vld [vmem:[%s791_s27] sm:$0x1]  ;;  %s1358_s27 = sld [smem:[#allocation4 + $0x3b]] }
 0x4df   :  { %1956 = vmatprep.subr.bf16.mxu1 %v2134_v0  ;;  %v1066_v51 = vld [vmem:[%s1065_s7] sm:$0x1] }
 0x4e2   :  { %1958 = vmatpush3.bf16.msra.mxu1 %v2249_v13  ;;  %v804_v13 = vld [vmem:[%s803_s29] sm:$0x1]  ;;  %s1069_s29 = scalar_lea.vmem [#allocation8], %s1356_s24 }
 0x4e3   :  { %1959 = vmatprep.subr.bf16.mxu1 %v2134_v0  ;;  %v1070_v47 = vld [vmem:[%s1069_s29] sm:$0x1] }
 0x4e4   :  { %v1096_v50 = vrot.slane %v1070_v47, 7  ;;  %s1077_s9 = scalar_lea.vmem [#allocation8], %s1358_s27 }
 0x4e5   :  { %v1078_v52 = vld [vmem:[%s1077_s9] sm:$0x1] }
 0x4e6   :  { %1961 = vmatpush3.bf16.msra.mxu1 %v2255_v16  ;;  %v825_v16 = vrot.slane %v800_v5, 6  ;;  %v1116_v54 = vsel %vm151_vm1, %v1066_v51, %v1096_v50  ;;  %v1102_v56 = vrot.slane %v1078_v52, 5  ;;  %v1086_v5 = vld [vmem:[%s1085_s11] sm:$0x1] }
 0x4e7   :  { %1962 = vmatprep.subr.bf16.mxu1 %v2134_v0 }
 0x4ea   :  { %1964 = vmatpush3.bf16.msra.mxu1 %v2261_v19  ;;  %v808_v19 = vld [vmem:[%s807_s2] sm:$0x1]  ;;  %s1073_s2 = scalar_lea.vmem [#allocation8], %s1357_s25 }
 0x4eb   :  { %1965 = vmatprep.subr.bf16.mxu1 %v2134_v0  ;;  %v831_v58 = vrot.slane %v808_v19, 4  ;;  %v1074_v48 = vld [vmem:[%s1073_s2] sm:$0x1] }
 0x4ec   :  { %v1099_v53 = vrot.slane %v1074_v48, 6  ;;  %v1094_v19 = vld [vmem:[%s1093_s13] sm:$0x1] }
 0x4ed   :  { %v1114_v57 = vrot.slane %v1094_v19, 1 }
 0x4ee   :  { %1967 = vmatpush3.bf16.msra.mxu1 %v2267_v22  ;;  %v828_v22 = vrot.slane %v804_v13, 5  ;;  %v1117_v1 = vsel %vm153_vm2, %v1116_v54, %v1099_v53  ;;  %v1090_v13 = vld [vmem:[%s1089_s12] sm:$0x1] }
 0x4ef   :  { %1968 = vmatprep.subr.bf16.mxu1 %v2134_v0  ;;  %v842_v0 = vsel %vm151_vm1, %v792_v10, %v822_v7  ;;  %v1105_v7 = vrot.slane %v1082_v55, 4  ;;  %v1118_v10 = vsel %vm155_vm3, %v1117_v1, %v1102_v56 }
 0x4f2   :  { %1970 = vmatpush3.bf16.msra.mxu1 %v2273_v25  ;;  %v843_v25 = vsel %vm153_vm2, %v842_v0, %v825_v16  ;;  %v1108_v16 = vrot.slane %v1086_v5, 3  ;;  %v1119_v0 = vsel %vm157_vm4, %v1118_v10, %v1105_v7 }
 0x4f3   :  { %v844_v59 = vsel %vm155_vm3, %v843_v25, %v828_v22  ;;  %v1111_v22 = vrot.slane %v1090_v13, 2 }
 0x4f4   :  { %v845_v62 = vsel %vm157_vm4, %v844_v59, %v831_v58  ;;  %v1120_v25 = vsel %vm159_vm5, %v1119_v0, %v1108_v16 }
 0x4f5   :  { %v846_v3 = vsel %vm159_vm5, %v845_v62, %v834_v61  ;;  %v1121_v58 = vsel %vm161_vm6, %v1120_v25, %v1111_v22 }
 0x4f6   :  { %v847_v6 = vsel %vm161_vm6, %v846_v3, %v837_v2  ;;  %v1122_v59 = vsel %vm163_vm7, %v1121_v58, %v1114_v57 }
 0x4f7   :  { %v848_v8 = vsel %vm163_vm7, %v847_v6, %v840_v4 }
 0x5a8   :  { %v915_v9 = vpop.f32.mrb[4].mxu1 }
 0x5a9   :  { %v919_v11 = vadd.f32 %v915_v9, %v848_v8  ;;  %v1708_v12 = vpop.f32.mrb[5].mxu1 }
 0x5ab   :  { %v920_v14 = vadd.f32 %v2310_v49, %v919_v11 }
 0x5ad   :  { %1992 = vtanh.f32 %v920_v14 }
 0x5b7   :  { %v1993_v15 = vpop.eup %1992 }
 0x5b8   :  { %923 = vst [vmem:[#allocation11 + $0x28] sm:$0xff] %v1993_v15  ;;  %1742 = vmatmul.mubr.f32.vlgmr.msra.gmra.mrb[6].mxu0 %v1993_v15 }
 0x68b   :  { %v1052_v42 = vpop.f32.mrb[6].mxu0 }
 0x68c   :  { %v1056_v43 = vadd.f32 %v1052_v42, %v985_v41  ;;  %v1743_v44 = vpop.f32.mrb[7].mxu0 }
 0x68e   :  { %v1057_v45 = vadd.f32 %v2310_v49, %v1056_v43 }
 0x690   :  { %1994 = vtanh.f32 %v1057_v45 }
 0x69a   :  { %v1995_v46 = vpop.eup %1994 }
 0x69b   :  { %1060 = vst [vmem:[#allocation11 + $0x30] sm:$0xff] %v1995_v46  ;;  %1777 = vmatmul.mubr.f32.vlgmr.msra.gmra.mrb[6].mxu1 %v1995_v46 }
 0x76e   :  { %v1189_v60 = vpop.f32.mrb[6].mxu1 }
 0x76f   :  { %v1193_v61 = vadd.f32 %v1189_v60, %v1122_v59  ;;  %v1778_v62 = vpop.f32.mrb[7].mxu1 }
 0x771   :  { %v1194_v63 = vadd.f32 %v2310_v49, %v1193_v61 }
 0x773   :  { %1996 = vtanh.f32 %v1194_v63 }
 0x77d   :  { %v1997_v2 = vpop.eup %1996 }
 0x77e   :  { %1197 = vst [vmem:[#allocation11 + $0x38] sm:$0xff] %v1997_v2  ;;  %1202 = vst [vmem:[#allocation12] sm:$0xff] %v1997_v2 }
 0x77f   :  { %2085 = shalt.err (!%p2082_p3)
}
 0x780   :  { %s2086_s20 = scalar_lea.hbm %s2489_s5, 1024 }
 0x781   :  { %p2087_p4 = scmp.ne.s32.totalorder %s2489_s5, %s2086_s20  ;;  %p2090_p5 = scmp.lt.u32.totalorder %s2086_s20, %s2489_s5 }
 0x783   :  { %p2092_p6 = pnand %p2090_p5, %p2087_p4 }
 0x785   :  { %2095 = shalt.err (!%p2092_p6)
}
 0x786   :  { %1214 = dma.vmem_to_hbm [thread:$0]  %s1209_s0, 1024, %s2489_s5, [#allocation7], %s2130_s16, %s2130_s16, %s2131_s17  }
 0x787   :  { %s2096_s27 = scalar_lea.vmem %s1222_s1, 128  ;;  %p2101_p8 = scmp.lt.s32.totalorder %s1222_s1, %s1222_s1 }
 0x788   :  { %p2097_p7 = scmp.ne.s32.totalorder %s1222_s1, %s2096_s27  ;;  %p2102_p9 = scmp.lt.s32.totalorder %s2096_s27, %s2096_s27 }
 0x78a   :  { %p2103_p10 = por %p2102_p9, %p2101_p8 }
 0x78c   :  { %p2104_p11 = pnand %p2103_p10, %p2097_p7 }
 0x78e   :  { %2107 = shalt.err (!%p2104_p11)
}
 0x78f   :  { %s2108_s30 = scalar_lea.hbm %s2490_s6, 128 }
 0x790   :  { %p2109_p12 = scmp.ne.s32.totalorder %s2490_s6, %s2108_s30  ;;  %p2112_p13 = scmp.lt.u32.totalorder %s2108_s30, %s2490_s6 }
 0x792   :  { %p2114_p0 = pnand %p2112_p13, %p2109_p12 }
 0x794   :  { %2117 = shalt.err (!%p2114_p0)
}
 0x795   :  { %1224 = dma.vmem_to_hbm [thread:$0]  %s1222_s1, 128, %s2490_s6, [#allocation13]  }
 0x796   :  { %2124 = dma.done.wait [#allocation7], 1024  }
 0x797   :  { %2125 = vsyncadd [#allocation7], 4294966272 }
 0x798   :  { %2126 = dma.done.wait [#allocation13], 128  }
 0x799   :  { %2127 = vsyncadd [#allocation13], 4294967168 }
 0x79a   :  { %1231 = vsyncpa [#allocation6], 1 }
 0x79b   :  { %1232 = vsyncpa [#allocation9], 1 }
 0x79c   :  { %1233 = vsyncpa [#allocation7], 1 }
 0x79d   :  { %1234 = vsyncpa [#allocation13], 1 }

</bundles_post_ra>
